<compile_context>
chip_gen: v5e
topology: v5e:2x2
jax: 0.10.0
libtpu: 0.0.40
codegen_flags: <defaults>
</compile_context>

<pallas_src>
import functools
import math

import jax
import jax.numpy as jnp
from jax.experimental import pallas as pl
from jax.experimental.pallas import tpu as pltpu


# ----------------------------------------------------------------------------
# Fused kernel: one grid step = (batch element b, encoder layer l)
# ----------------------------------------------------------------------------
def fused_forward_kernel(
    emb_ref, pe_ref, mask_ref,
    wq_ref, bq_ref, wk_ref, bk_ref, wv_ref, bv_ref,
    wo_ref, bo_ref, ln1w_ref, ln1b_ref,
    w1_ref, b1_ref, w2_ref, b2_ref, ln2w_ref, ln2b_ref,
    wdec_ref, bdec_ref,
    out_ref,
    x_ref,                     # VMEM scratch (S, D): layer-resident activation
    *, nhead, emb_scale):
    layer = pl.program_id(1)
    nlayers = pl.num_programs(1)
    eps = 1e-5

    # ---- PositionalEncoding: x = emb * sqrt(d_model) + pe ----
    # TODO(synk): dropout (p=0.2) omitted -> eval-mode identity.
    @pl.when(layer == 0)
    def _():
        x_ref[...] = emb_ref[0] * emb_scale + pe_ref[...]

    x = x_ref[...]                               # (S, D)
    S, D = x.shape
    hd = D // nhead
    inv_sqrt_hd = 1.0 / math.sqrt(hd)

    # Additive key-padding mask built in-kernel; finite large negative so an
    # all-masked row gives a uniform softmax instead of NaN.
    add_mask = jnp.where(mask_ref[0] != 0,
                         jnp.float32(-1e30), jnp.float32(0.0))      # (1, S)

    # ---- multi-head self-attention (heads batched; no loop / concat) ----
    xb = jnp.broadcast_to(x, (nhead, S, D))                          # (H, S, D)
    q = jnp.einsum('hsd,hde->hse', xb, wq_ref[0],
                   preferred_element_type=jnp.float32) + bq_ref[0]   # (H, S, hd)
    k = jnp.einsum('hsd,hde->hse', xb, wk_ref[0],
                   preferred_element_type=jnp.float32) + bk_ref[0]
    v = jnp.einsum('hsd,hde->hse', xb, wv_ref[0],
                   preferred_element_type=jnp.float32) + bv_ref[0]

    s = jnp.einsum('hqe,hke->hqk', q * inv_sqrt_hd, k,
                   preferred_element_type=jnp.float32)               # (H, S, S)
    s = s + add_mask[None, :, :]
    s = s - jnp.max(s, axis=-1, keepdims=True)
    p = jnp.exp(s)
    p = p / jnp.sum(p, axis=-1, keepdims=True)

    o = jnp.einsum('hqk,hke->hqe', p, v,
                   preferred_element_type=jnp.float32)               # (H, S, hd)
    # output projection folded per head, then summed over heads -> (S, D)
    attn = jnp.sum(jnp.einsum('hqe,hed->hqd', o, wo_ref[0],
                              preferred_element_type=jnp.float32),
                   axis=0) + bo_ref[0]

    # ---- residual + LayerNorm 1 (post-norm) ----
    x1 = x + attn
    mu1 = jnp.mean(x1, axis=-1, keepdims=True)
    var1 = jnp.mean((x1 - mu1) ** 2, axis=-1, keepdims=True)
    x1 = (x1 - mu1) * jax.lax.rsqrt(var1 + eps) * ln1w_ref[0] + ln1b_ref[0]

    # ---- feed-forward (ReLU) ----
    h = jnp.dot(x1, w1_ref[0], preferred_element_type=jnp.float32) + b1_ref[0]
    h = jnp.maximum(h, 0.0)
    h = jnp.dot(h, w2_ref[0], preferred_element_type=jnp.float32) + b2_ref[0]

    # ---- residual + LayerNorm 2 ----
    x2 = x1 + h
    mu2 = jnp.mean(x2, axis=-1, keepdims=True)
    var2 = jnp.mean((x2 - mu2) ** 2, axis=-1, keepdims=True)
    x2 = (x2 - mu2) * jax.lax.rsqrt(var2 + eps) * ln2w_ref[0] + ln2b_ref[0]

    x_ref[...] = x2

    # ---- final layer: max over sequence + Linear(d_model, 2) ----
    @pl.when(layer == nlayers - 1)
    def _():
        pooled = jnp.max(x2, axis=0, keepdims=True)                  # (1, D)
        out_ref[0] = jnp.dot(pooled, wdec_ref[...],
                             preferred_element_type=jnp.float32) + bdec_ref[...]


# ----------------------------------------------------------------------------
# Wrapper
# ----------------------------------------------------------------------------
def make_positional_encoding(S, D):
    pos = jnp.arange(S, dtype=jnp.float32)[:, None]
    div = jnp.exp(jnp.arange(0, D, 2, dtype=jnp.float32) * (-math.log(10000.0) / D))
    pe = jnp.zeros((S, D), jnp.float32)
    pe = pe.at[:, 0::2].set(jnp.sin(pos * div))
    pe = pe.at[:, 1::2].set(jnp.cos(pos * div))
    return pe


def _layer_spec(arr):
    """Full-extent per-layer block: (1, *arr.shape[1:]), indexed by layer l."""
    nd = arr.ndim
    return pl.BlockSpec((1,) + tuple(arr.shape[1:]),
                        lambda b, l, nd=nd: (l,) + (0,) * (nd - 1))


def encoder_classifier_forward(src, params, *, nhead):
    """src: (S, B) int32 token ids (sequence-first, as in the PyTorch reference)."""
    S, B = src.shape
    D = params["emb"].shape[1]
    nlayers = params["wq"].shape[0]
    hd = D // nhead

    # source_mask = (src == 1).reshape(B, S) -- raw reshape, reproduced verbatim
    pad_mask = jnp.reshape(src == 1, (B, 1, S)).astype(jnp.int32)

    # embedding lookup (gather glue) then to kernel layout [B, S, D]
    emb = jnp.take(params["emb"], src, axis=0)           # (S, B, D)
    emb = jnp.transpose(emb, (1, 0, 2))                  # (B, S, D)

    pe = make_positional_encoding(S, D)                  # (S, D)

    kernel = functools.partial(fused_forward_kernel,
                               nhead=nhead, emb_scale=math.sqrt(D))

    out = pl.pallas_call(
        kernel,
        out_shape=jax.ShapeDtypeStruct((B, 1, 2), jnp.float32),
        grid=(B, nlayers),
        in_specs=[
            pl.BlockSpec((1, S, D), lambda b, l: (b, 0, 0)),   # emb
            pl.BlockSpec((S, D), lambda b, l: (0, 0)),         # pe table
            pl.BlockSpec((1, 1, S), lambda b, l: (b, 0, 0)),   # int pad-mask
            _layer_spec(params["wq"]), _layer_spec(params["bq"]),
            _layer_spec(params["wk"]), _layer_spec(params["bk"]),
            _layer_spec(params["wv"]), _layer_spec(params["bv"]),
            _layer_spec(params["wo"]), _layer_spec(params["bo"]),
            _layer_spec(params["ln1w"]), _layer_spec(params["ln1b"]),
            _layer_spec(params["w1"]), _layer_spec(params["b1"]),
            _layer_spec(params["w2"]), _layer_spec(params["b2"]),
            _layer_spec(params["ln2w"]), _layer_spec(params["ln2b"]),
            pl.BlockSpec((D, 2), lambda b, l: (0, 0)),         # decoder W
            pl.BlockSpec((1, 2), lambda b, l: (0, 0)),         # decoder b
        ],
        out_specs=pl.BlockSpec((1, 1, 2), lambda b, l: (b, 0, 0)),
        scratch_shapes=[pltpu.VMEM((S, D), jnp.float32)],
        compiler_params=pltpu.CompilerParams(
            dimension_semantics=("parallel", "arbitrary")),
    )(emb, pe, pad_mask,
      params["wq"], params["bq"], params["wk"], params["bk"],
      params["wv"], params["bv"], params["wo"], params["bo"],
      params["ln1w"], params["ln1b"], params["w1"], params["b1"],
      params["w2"], params["b2"], params["ln2w"], params["ln2b"],
      params["dec_w"], params["dec_b"])

    return out.reshape(B, 2)


# ----------------------------------------------------------------------------
# Parameter init (head-split weight layout, stacked over layers)
# ----------------------------------------------------------------------------
def init_params(key, ntoken, D, nhid, nlayers, nhead):
    hd = D // nhead
    keys = jax.random.split(key, 3 + nlayers)
    params = {
        "emb": jax.random.uniform(keys[0], (ntoken, D), jnp.float32, -0.1, 0.1),
        "dec_w": jax.random.uniform(keys[1], (D, 2), jnp.float32, -0.1, 0.1),
        "dec_b": jax.random.uniform(keys[2], (1, 2), jnp.float32, -0.1, 0.1),
    }

    def head_split_in(w):    # (D, D), output cols h*hd+e -> (nhead, D, hd)
        return w.reshape(D, nhead, hd).transpose(1, 0, 2)

    acc = {name: [] for name in
           ("wq", "bq", "wk", "bk", "wv", "bv", "wo", "bo",
            "ln1w", "ln1b", "w1", "b1", "w2", "b2", "ln2w", "ln2b")}
    for l in range(nlayers):
        lk = jax.random.split(keys[3 + l], 6)
        acc["wq"].append(head_split_in(0.05 * jax.random.normal(lk[0], (D, D), jnp.float32)))
        acc["wk"].append(head_split_in(0.05 * jax.random.normal(lk[1], (D, D), jnp.float32)))
        acc["wv"].append(head_split_in(0.05 * jax.random.normal(lk[2], (D, D), jnp.float32)))
        acc["bq"].append(jnp.zeros((nhead, 1, hd), jnp.float32))
        acc["bk"].append(jnp.zeros((nhead, 1, hd), jnp.float32))
        acc["bv"].append(jnp.zeros((nhead, 1, hd), jnp.float32))
        # (D, D) with input rows h*hd+e -> (nhead, hd, D)
        acc["wo"].append((0.05 * jax.random.normal(lk[3], (D, D), jnp.float32)).reshape(nhead, hd, D))
        acc["bo"].append(jnp.zeros((1, D), jnp.float32))
        acc["ln1w"].append(jnp.ones((1, D), jnp.float32))
        acc["ln1b"].append(jnp.zeros((1, D), jnp.float32))
        acc["w1"].append(0.05 * jax.random.normal(lk[4], (D, nhid), jnp.float32))
        acc["b1"].append(jnp.zeros((1, nhid), jnp.float32))
        acc["w2"].append(0.05 * jax.random.normal(lk[5], (nhid, D), jnp.float32))
        acc["b2"].append(jnp.zeros((1, D), jnp.float32))
        acc["ln2w"].append(jnp.ones((1, D), jnp.float32))
        acc["ln2b"].append(jnp.zeros((1, D), jnp.float32))

    for name, vals in acc.items():
        params[name] = jnp.stack(vals, axis=0)
    return params


# ----------------------------------------------------------------------------
if __name__ == "__main__":
    ntoken = 50
    d_model = 32
    nhead = 4
    nhid = 64
    nlayers = 2
    seq_len = 8
    batch = 2

    key = jax.random.PRNGKey(0)
    k_tok, k_par = jax.random.split(key)

    src = jax.random.randint(k_tok, (seq_len, batch), 0, ntoken, dtype=jnp.int32)
    params = init_params(k_par, ntoken, d_model, nhid, nlayers, nhead)

    logits = encoder_classifier_forward(src, params, nhead=nhead)
    logits = jax.block_until_ready(logits)

    assert logits.shape == (batch, 2) and logits.dtype == jnp.float32
    assert bool(jnp.all(jnp.isfinite(logits)))
    print("KERNEL_OK")
</pallas_src>

<mosaic_0001>
module attributes {stable_mosaic.version = 11 : i64} {
  func.func @fused_forward_kernel(%arg0: i32, %arg1: i32, %arg2: memref<1x8x32xf32, #tpu.memory_space<vmem>>, %arg3: memref<8x32xf32, #tpu.memory_space<vmem>>, %arg4: memref<1x1x8xi32, #tpu.memory_space<vmem>>, %arg5: memref<1x4x32x8xf32, #tpu.memory_space<vmem>>, %arg6: memref<1x4x1x8xf32, #tpu.memory_space<vmem>>, %arg7: memref<1x4x32x8xf32, #tpu.memory_space<vmem>>, %arg8: memref<1x4x1x8xf32, #tpu.memory_space<vmem>>, %arg9: memref<1x4x32x8xf32, #tpu.memory_space<vmem>>, %arg10: memref<1x4x1x8xf32, #tpu.memory_space<vmem>>, %arg11: memref<1x4x8x32xf32, #tpu.memory_space<vmem>>, %arg12: memref<1x1x32xf32, #tpu.memory_space<vmem>>, %arg13: memref<1x1x32xf32, #tpu.memory_space<vmem>>, %arg14: memref<1x1x32xf32, #tpu.memory_space<vmem>>, %arg15: memref<1x32x64xf32, #tpu.memory_space<vmem>>, %arg16: memref<1x1x64xf32, #tpu.memory_space<vmem>>, %arg17: memref<1x64x32xf32, #tpu.memory_space<vmem>>, %arg18: memref<1x1x32xf32, #tpu.memory_space<vmem>>, %arg19: memref<1x1x32xf32, #tpu.memory_space<vmem>>, %arg20: memref<1x1x32xf32, #tpu.memory_space<vmem>>, %arg21: memref<32x2xf32, #tpu.memory_space<vmem>>, %arg22: memref<1x2xf32, #tpu.memory_space<vmem>>, %arg23: memref<1x1x2xf32, #tpu.memory_space<vmem>>, %arg24: memref<8x32xf32, #tpu.memory_space<vmem>>) attributes {dimension_semantics = [#tpu.dimension_semantics<parallel>, #tpu.dimension_semantics<arbitrary>], iteration_bounds = array<i64: 2, 2>, scalar_prefetch = 0 : i64, scratch_operands = 1 : i64, tpu.core_type = #tpu.core_type<tc>, window_params = [{transform_indices = @transform_0, window_bounds = array<i64: 1, 8, 32>}, {pipeline_mode = #tpu.pipeline_mode<synchronous>, transform_indices = @transform_1, window_bounds = array<i64: 8, 32>}, {transform_indices = @transform_2, window_bounds = array<i64: 1, 1, 8>}, {transform_indices = @transform_3, window_bounds = array<i64: 1, 4, 32, 8>}, {transform_indices = @transform_4, window_bounds = array<i64: 1, 4, 1, 8>}, {transform_indices = @transform_5, window_bounds = array<i64: 1, 4, 32, 8>}, {transform_indices = @transform_6, window_bounds = array<i64: 1, 4, 1, 8>}, {transform_indices = @transform_7, window_bounds = array<i64: 1, 4, 32, 8>}, {transform_indices = @transform_8, window_bounds = array<i64: 1, 4, 1, 8>}, {transform_indices = @transform_9, window_bounds = array<i64: 1, 4, 8, 32>}, {transform_indices = @transform_10, window_bounds = array<i64: 1, 1, 32>}, {transform_indices = @transform_11, window_bounds = array<i64: 1, 1, 32>}, {transform_indices = @transform_12, window_bounds = array<i64: 1, 1, 32>}, {transform_indices = @transform_13, window_bounds = array<i64: 1, 32, 64>}, {transform_indices = @transform_14, window_bounds = array<i64: 1, 1, 64>}, {transform_indices = @transform_15, window_bounds = array<i64: 1, 64, 32>}, {transform_indices = @transform_16, window_bounds = array<i64: 1, 1, 32>}, {transform_indices = @transform_17, window_bounds = array<i64: 1, 1, 32>}, {transform_indices = @transform_18, window_bounds = array<i64: 1, 1, 32>}, {pipeline_mode = #tpu.pipeline_mode<synchronous>, transform_indices = @transform_19, window_bounds = array<i64: 32, 2>}, {pipeline_mode = #tpu.pipeline_mode<synchronous>, transform_indices = @transform_20, window_bounds = array<i64: 1, 2>}, {transform_indices = @transform_21, window_bounds = array<i64: 1, 1, 2>}]} {
    %c0_i32 = arith.constant 0 : i32
    %0 = arith.cmpi eq, %arg1, %c0_i32 : i32
    %1 = arith.extui %0 : i1 to i32
    %c0_i32_0 = arith.constant 0 : i32
    %2 = arith.cmpi ne, %1, %c0_i32_0 : i32
    scf.if %2 {
      %c0_88 = arith.constant 0 : index
      %c0_89 = arith.constant 0 : index
      %c0_90 = arith.constant 0 : index
      %132 = vector.load %arg2[%c0_88, %c0_89, %c0_90] : memref<1x8x32xf32, #tpu.memory_space<vmem>>, vector<1x8x32xf32>
      %133 = vector.shape_cast %132 : vector<1x8x32xf32> to vector<8x32xf32>
      %cst_91 = arith.constant 5.65685415 : f32
      %134 = vector.broadcast %cst_91 : f32 to vector<8x32xf32>
      %135 = arith.mulf %133, %134 : vector<8x32xf32>
      %c0_92 = arith.constant 0 : index
      %c0_93 = arith.constant 0 : index
      %136 = vector.load %arg3[%c0_92, %c0_93] : memref<8x32xf32, #tpu.memory_space<vmem>>, vector<8x32xf32>
      %137 = arith.addf %135, %136 : vector<8x32xf32>
      %c0_94 = arith.constant 0 : index
      %c0_95 = arith.constant 0 : index
      %138 = vector.load %arg24[%c0_94, %c0_95] : memref<8x32xf32, #tpu.memory_space<vmem>>, vector<8x32xf32>
      tpu.vector_store %arg24[%c0_94, %c0_95], %137 {strides = array<i32>} : memref<8x32xf32, #tpu.memory_space<vmem>>, vector<8x32xf32>,
    } else {
    }
    %c0 = arith.constant 0 : index
    %c0_1 = arith.constant 0 : index
    %3 = vector.load %arg24[%c0, %c0_1] : memref<8x32xf32, #tpu.memory_space<vmem>>, vector<8x32xf32>
    %c0_2 = arith.constant 0 : index
    %c0_3 = arith.constant 0 : index
    %c0_4 = arith.constant 0 : index
    %4 = vector.load %arg4[%c0_2, %c0_3, %c0_4] : memref<1x1x8xi32, #tpu.memory_space<vmem>>, vector<1x1x8xi32>
    %5 = vector.shape_cast %4 : vector<1x1x8xi32> to vector<1x8xi32>
    %c0_i32_5 = arith.constant 0 : i32
    %6 = vector.broadcast %c0_i32_5 : i32 to vector<1x8xi32>
    %7 = arith.cmpi ne, %5, %6 : vector<1x8xi32>
    %cst = arith.constant -1.000000e+30 : f32
    %cst_6 = arith.constant 0.000000e+00 : f32
    %8 = vector.broadcast %cst : f32 to vector<1x8xf32>
    %9 = vector.broadcast %cst_6 : f32 to vector<1x8xf32>
    %10 = arith.select %7, %8, %9 : vector<1x8xi1>, vector<1x8xf32>
    %11 = vector.shape_cast %3 : vector<8x32xf32> to vector<1x8x32xf32>
    %12 = vector.broadcast %11 : vector<1x8x32xf32> to vector<4x8x32xf32>
    %c0_7 = arith.constant 0 : index
    %c0_8 = arith.constant 0 : index
    %c0_9 = arith.constant 0 : index
    %c0_10 = arith.constant 0 : index
    %13 = vector.load %arg5[%c0_7, %c0_8, %c0_9, %c0_10] : memref<1x4x32x8xf32, #tpu.memory_space<vmem>>, vector<1x4x32x8xf32>
    %14 = vector.shape_cast %13 : vector<1x4x32x8xf32> to vector<4x32x8xf32>
    "tpu.trace_start"() <{level = 10 : i32, message = "hsd,hde->hse"}> : () -> ()
    %cst_11 = arith.constant dense<0.000000e+00> : vector<4x8x8xf32>
    %15 = tpu.matmul %12, %14, %cst_11 {dimension_numbers = #tpu.dot_dimension_numbers<[2], [1], [1], [2], [0, 0, 0, 1, 1, 2], [0], [0]>} : vector<4x8x32xf32>, vector<4x32x8xf32>, vector<4x8x8xf32> -> vector<4x8x8xf32>
    "tpu.trace_stop"() : () -> ()
    %c0_12 = arith.constant 0 : index
    %c0_13 = arith.constant 0 : index
    %c0_14 = arith.constant 0 : index
    %c0_15 = arith.constant 0 : index
    %16 = vector.load %arg6[%c0_12, %c0_13, %c0_14, %c0_15] : memref<1x4x1x8xf32, #tpu.memory_space<vmem>>, vector<1x4x1x8xf32>
    %17 = vector.shape_cast %16 : vector<1x4x1x8xf32> to vector<4x1x8xf32>
    %18 = vector.broadcast %17 : vector<4x1x8xf32> to vector<4x8x8xf32>
    %19 = arith.addf %15, %18 : vector<4x8x8xf32>
    %c0_16 = arith.constant 0 : index
    %c0_17 = arith.constant 0 : index
    %c0_18 = arith.constant 0 : index
    %c0_19 = arith.constant 0 : index
    %20 = vector.load %arg7[%c0_16, %c0_17, %c0_18, %c0_19] : memref<1x4x32x8xf32, #tpu.memory_space<vmem>>, vector<1x4x32x8xf32>
    %21 = vector.shape_cast %20 : vector<1x4x32x8xf32> to vector<4x32x8xf32>
    "tpu.trace_start"() <{level = 10 : i32, message = "hsd,hde->hse"}> : () -> ()
    %cst_20 = arith.constant dense<0.000000e+00> : vector<4x8x8xf32>
    %22 = tpu.matmul %12, %21, %cst_20 {dimension_numbers = #tpu.dot_dimension_numbers<[2], [1], [1], [2], [0, 0, 0, 1, 1, 2], [0], [0]>} : vector<4x8x32xf32>, vector<4x32x8xf32>, vector<4x8x8xf32> -> vector<4x8x8xf32>
    "tpu.trace_stop"() : () -> ()
    %c0_21 = arith.constant 0 : index
    %c0_22 = arith.constant 0 : index
    %c0_23 = arith.constant 0 : index
    %c0_24 = arith.constant 0 : index
    %23 = vector.load %arg8[%c0_21, %c0_22, %c0_23, %c0_24] : memref<1x4x1x8xf32, #tpu.memory_space<vmem>>, vector<1x4x1x8xf32>
    %24 = vector.shape_cast %23 : vector<1x4x1x8xf32> to vector<4x1x8xf32>
    %25 = vector.broadcast %24 : vector<4x1x8xf32> to vector<4x8x8xf32>
    %26 = arith.addf %22, %25 : vector<4x8x8xf32>
    %c0_25 = arith.constant 0 : index
    %c0_26 = arith.constant 0 : index
    %c0_27 = arith.constant 0 : index
    %c0_28 = arith.constant 0 : index
    %27 = vector.load %arg9[%c0_25, %c0_26, %c0_27, %c0_28] : memref<1x4x32x8xf32, #tpu.memory_space<vmem>>, vector<1x4x32x8xf32>
    %28 = vector.shape_cast %27 : vector<1x4x32x8xf32> to vector<4x32x8xf32>
    "tpu.trace_start"() <{level = 10 : i32, message = "hsd,hde->hse"}> : () -> ()
    %cst_29 = arith.constant dense<0.000000e+00> : vector<4x8x8xf32>
    %29 = tpu.matmul %12, %28, %cst_29 {dimension_numbers = #tpu.dot_dimension_numbers<[2], [1], [1], [2], [0, 0, 0, 1, 1, 2], [0], [0]>} : vector<4x8x32xf32>, vector<4x32x8xf32>, vector<4x8x8xf32> -> vector<4x8x8xf32>
    "tpu.trace_stop"() : () -> ()
    %c0_30 = arith.constant 0 : index
    %c0_31 = arith.constant 0 : index
    %c0_32 = arith.constant 0 : index
    %c0_33 = arith.constant 0 : index
    %30 = vector.load %arg10[%c0_30, %c0_31, %c0_32, %c0_33] : memref<1x4x1x8xf32, #tpu.memory_space<vmem>>, vector<1x4x1x8xf32>
    %31 = vector.shape_cast %30 : vector<1x4x1x8xf32> to vector<4x1x8xf32>
    %32 = vector.broadcast %31 : vector<4x1x8xf32> to vector<4x8x8xf32>
    %33 = arith.addf %29, %32 : vector<4x8x8xf32>
    %cst_34 = arith.constant 0.353553385 : f32
    %34 = vector.broadcast %cst_34 : f32 to vector<4x8x8xf32>
    %35 = arith.mulf %19, %34 : vector<4x8x8xf32>
    "tpu.trace_start"() <{level = 10 : i32, message = "hqe,hke->hqk"}> : () -> ()
    %cst_35 = arith.constant dense<0.000000e+00> : vector<4x8x8xf32>
    %36 = tpu.matmul %35, %26, %cst_35 {dimension_numbers = #tpu.dot_dimension_numbers<[2], [2], [1], [1], [0, 0, 0, 1, 1, 1], [0], [0]>} : vector<4x8x8xf32>, vector<4x8x8xf32>, vector<4x8x8xf32> -> vector<4x8x8xf32>
    "tpu.trace_stop"() : () -> ()
    %37 = vector.shape_cast %10 : vector<1x8xf32> to vector<1x1x8xf32>
    %38 = vector.broadcast %37 : vector<1x1x8xf32> to vector<4x8x8xf32>
    %39 = arith.addf %36, %38 : vector<4x8x8xf32>
    %cst_36 = arith.constant dense<0xFF800000> : vector<4x8xf32>
    %40 = vector.multi_reduction <maximumf>, %39, %cst_36 [2] : vector<4x8x8xf32> to vector<4x8xf32>
    %41 = vector.shape_cast %40 : vector<4x8xf32> to vector<4x8x1xf32>
    %42 = vector.broadcast %41 : vector<4x8x1xf32> to vector<4x8x8xf32>
    %43 = arith.subf %39, %42 : vector<4x8x8xf32>
    %44 = math.exp %43 : vector<4x8x8xf32>
    %cst_37 = arith.constant dense<0.000000e+00> : vector<4x8xf32>
    %45 = vector.multi_reduction <add>, %44, %cst_37 [2] : vector<4x8x8xf32> to vector<4x8xf32>
    %46 = vector.shape_cast %45 : vector<4x8xf32> to vector<4x8x1xf32>
    %47 = vector.broadcast %46 : vector<4x8x1xf32> to vector<4x8x8xf32>
    %48 = arith.divf %44, %47 : vector<4x8x8xf32>
    "tpu.trace_start"() <{level = 10 : i32, message = "hqk,hke->hqe"}> : () -> ()
    %cst_38 = arith.constant dense<0.000000e+00> : vector<4x8x8xf32>
    %49 = tpu.matmul %48, %33, %cst_38 {dimension_numbers = #tpu.dot_dimension_numbers<[2], [1], [1], [2], [0, 0, 0, 1, 1, 2], [0], [0]>} : vector<4x8x8xf32>, vector<4x8x8xf32>, vector<4x8x8xf32> -> vector<4x8x8xf32>
    "tpu.trace_stop"() : () -> ()
    %c0_39 = arith.constant 0 : index
    %c0_40 = arith.constant 0 : index
    %c0_41 = arith.constant 0 : index
    %c0_42 = arith.constant 0 : index
    %50 = vector.load %arg11[%c0_39, %c0_40, %c0_41, %c0_42] : memref<1x4x8x32xf32, #tpu.memory_space<vmem>>, vector<1x4x8x32xf32>
    %51 = vector.shape_cast %50 : vector<1x4x8x32xf32> to vector<4x8x32xf32>
    "tpu.trace_start"() <{level = 10 : i32, message = "hqe,hed->hqd"}> : () -> ()
    %cst_43 = arith.constant dense<0.000000e+00> : vector<4x8x32xf32>
    %52 = tpu.matmul %49, %51, %cst_43 {dimension_numbers = #tpu.dot_dimension_numbers<[2], [1], [1], [2], [0, 0, 0, 1, 1, 2], [0], [0]>} : vector<4x8x8xf32>, vector<4x8x32xf32>, vector<4x8x32xf32> -> vector<4x8x32xf32>
    "tpu.trace_stop"() : () -> ()
    %cst_44 = arith.constant dense<0.000000e+00> : vector<8x32xf32>
    %53 = vector.multi_reduction <add>, %52, %cst_44 [0] : vector<4x8x32xf32> to vector<8x32xf32>
    %c0_45 = arith.constant 0 : index
    %c0_46 = arith.constant 0 : index
    %c0_47 = arith.constant 0 : index
    %54 = vector.load %arg12[%c0_45, %c0_46, %c0_47] : memref<1x1x32xf32, #tpu.memory_space<vmem>>, vector<1x1x32xf32>
    %55 = vector.shape_cast %54 : vector<1x1x32xf32> to vector<1x32xf32>
    %56 = vector.broadcast %55 : vector<1x32xf32> to vector<8x32xf32>
    %57 = arith.addf %53, %56 : vector<8x32xf32>
    %58 = arith.addf %3, %57 : vector<8x32xf32>
    %cst_48 = arith.constant dense<0.000000e+00> : vector<8xf32>
    %59 = vector.multi_reduction <add>, %58, %cst_48 [1] : vector<8x32xf32> to vector<8xf32>
    %60 = vector.shape_cast %59 : vector<8xf32> to vector<8x1xf32>
    %cst_49 = arith.constant 3.200000e+01 : f32
    %61 = vector.broadcast %cst_49 : f32 to vector<8x1xf32>
    %62 = arith.divf %60, %61 : vector<8x1xf32>
    %63 = vector.broadcast %62 : vector<8x1xf32> to vector<8x32xf32>
    %64 = arith.subf %58, %63 : vector<8x32xf32>
    %65 = arith.mulf %64, %64 : vector<8x32xf32>
    %cst_50 = arith.constant dense<0.000000e+00> : vector<8xf32>
    %66 = vector.multi_reduction <add>, %65, %cst_50 [1] : vector<8x32xf32> to vector<8xf32>
    %67 = vector.shape_cast %66 : vector<8xf32> to vector<8x1xf32>
    %cst_51 = arith.constant 3.200000e+01 : f32
    %68 = vector.broadcast %cst_51 : f32 to vector<8x1xf32>
    %69 = arith.divf %67, %68 : vector<8x1xf32>
    %70 = vector.broadcast %62 : vector<8x1xf32> to vector<8x32xf32>
    %71 = arith.subf %58, %70 : vector<8x32xf32>
    %cst_52 = arith.constant 9.99999974E-6 : f32
    %72 = vector.broadcast %cst_52 : f32 to vector<8x1xf32>
    %73 = arith.addf %69, %72 : vector<8x1xf32>
    %74 = math.rsqrt %73 : vector<8x1xf32>
    %75 = vector.broadcast %74 : vector<8x1xf32> to vector<8x32xf32>
    %76 = arith.mulf %71, %75 : vector<8x32xf32>
    %c0_53 = arith.constant 0 : index
    %c0_54 = arith.constant 0 : index
    %c0_55 = arith.constant 0 : index
    %77 = vector.load %arg13[%c0_53, %c0_54, %c0_55] : memref<1x1x32xf32, #tpu.memory_space<vmem>>, vector<1x1x32xf32>
    %78 = vector.shape_cast %77 : vector<1x1x32xf32> to vector<1x32xf32>
    %79 = vector.broadcast %78 : vector<1x32xf32> to vector<8x32xf32>
    %80 = arith.mulf %76, %79 : vector<8x32xf32>
    %c0_56 = arith.constant 0 : index
    %c0_57 = arith.constant 0 : index
    %c0_58 = arith.constant 0 : index
    %81 = vector.load %arg14[%c0_56, %c0_57, %c0_58] : memref<1x1x32xf32, #tpu.memory_space<vmem>>, vector<1x1x32xf32>
    %82 = vector.shape_cast %81 : vector<1x1x32xf32> to vector<1x32xf32>
    %83 = vector.broadcast %82 : vector<1x32xf32> to vector<8x32xf32>
    %84 = arith.addf %80, %83 : vector<8x32xf32>
    %c0_59 = arith.constant 0 : index
    %c0_60 = arith.constant 0 : index
    %c0_61 = arith.constant 0 : index
    %85 = vector.load %arg15[%c0_59, %c0_60, %c0_61] : memref<1x32x64xf32, #tpu.memory_space<vmem>>, vector<1x32x64xf32>
    %86 = vector.shape_cast %85 : vector<1x32x64xf32> to vector<32x64xf32>
    %cst_62 = arith.constant dense<0.000000e+00> : vector<8x64xf32>
    %87 = tpu.matmul %84, %86, %cst_62 {dimension_numbers = #tpu.dot_dimension_numbers<[1], [0], [0], [1], [0, 0, 1, 1], [], []>} : vector<8x32xf32>, vector<32x64xf32>, vector<8x64xf32> -> vector<8x64xf32>
    %c0_63 = arith.constant 0 : index
    %c0_64 = arith.constant 0 : index
    %c0_65 = arith.constant 0 : index
    %88 = vector.load %arg16[%c0_63, %c0_64, %c0_65] : memref<1x1x64xf32, #tpu.memory_space<vmem>>, vector<1x1x64xf32>
    %89 = vector.shape_cast %88 : vector<1x1x64xf32> to vector<1x64xf32>
    %90 = vector.broadcast %89 : vector<1x64xf32> to vector<8x64xf32>
    %91 = arith.addf %87, %90 : vector<8x64xf32>
    %cst_66 = arith.constant 0.000000e+00 : f32
    %92 = vector.broadcast %cst_66 : f32 to vector<8x64xf32>
    %93 = arith.maximumf %91, %92 : vector<8x64xf32>
    %c0_67 = arith.constant 0 : index
    %c0_68 = arith.constant 0 : index
    %c0_69 = arith.constant 0 : index
    %94 = vector.load %arg17[%c0_67, %c0_68, %c0_69] : memref<1x64x32xf32, #tpu.memory_space<vmem>>, vector<1x64x32xf32>
    %95 = vector.shape_cast %94 : vector<1x64x32xf32> to vector<64x32xf32>
    %cst_70 = arith.constant dense<0.000000e+00> : vector<8x32xf32>
    %96 = tpu.matmul %93, %95, %cst_70 {dimension_numbers = #tpu.dot_dimension_numbers<[1], [0], [0], [1], [0, 0, 1, 1], [], []>} : vector<8x64xf32>, vector<64x32xf32>, vector<8x32xf32> -> vector<8x32xf32>
    %c0_71 = arith.constant 0 : index
    %c0_72 = arith.constant 0 : index
    %c0_73 = arith.constant 0 : index
    %97 = vector.load %arg18[%c0_71, %c0_72, %c0_73] : memref<1x1x32xf32, #tpu.memory_space<vmem>>, vector<1x1x32xf32>
    %98 = vector.shape_cast %97 : vector<1x1x32xf32> to vector<1x32xf32>
    %99 = vector.broadcast %98 : vector<1x32xf32> to vector<8x32xf32>
    %100 = arith.addf %96, %99 : vector<8x32xf32>
    %101 = arith.addf %84, %100 : vector<8x32xf32>
    %cst_74 = arith.constant dense<0.000000e+00> : vector<8xf32>
    %102 = vector.multi_reduction <add>, %101, %cst_74 [1] : vector<8x32xf32> to vector<8xf32>
    %103 = vector.shape_cast %102 : vector<8xf32> to vector<8x1xf32>
    %cst_75 = arith.constant 3.200000e+01 : f32
    %104 = vector.broadcast %cst_75 : f32 to vector<8x1xf32>
    %105 = arith.divf %103, %104 : vector<8x1xf32>
    %106 = vector.broadcast %105 : vector<8x1xf32> to vector<8x32xf32>
    %107 = arith.subf %101, %106 : vector<8x32xf32>
    %108 = arith.mulf %107, %107 : vector<8x32xf32>
    %cst_76 = arith.constant dense<0.000000e+00> : vector<8xf32>
    %109 = vector.multi_reduction <add>, %108, %cst_76 [1] : vector<8x32xf32> to vector<8xf32>
    %110 = vector.shape_cast %109 : vector<8xf32> to vector<8x1xf32>
    %cst_77 = arith.constant 3.200000e+01 : f32
    %111 = vector.broadcast %cst_77 : f32 to vector<8x1xf32>
    %112 = arith.divf %110, %111 : vector<8x1xf32>
    %113 = vector.broadcast %105 : vector<8x1xf32> to vector<8x32xf32>
    %114 = arith.subf %101, %113 : vector<8x32xf32>
    %cst_78 = arith.constant 9.99999974E-6 : f32
    %115 = vector.broadcast %cst_78 : f32 to vector<8x1xf32>
    %116 = arith.addf %112, %115 : vector<8x1xf32>
    %117 = math.rsqrt %116 : vector<8x1xf32>
    %118 = vector.broadcast %117 : vector<8x1xf32> to vector<8x32xf32>
    %119 = arith.mulf %114, %118 : vector<8x32xf32>
    %c0_79 = arith.constant 0 : index
    %c0_80 = arith.constant 0 : index
    %c0_81 = arith.constant 0 : index
    %120 = vector.load %arg19[%c0_79, %c0_80, %c0_81] : memref<1x1x32xf32, #tpu.memory_space<vmem>>, vector<1x1x32xf32>
    %121 = vector.shape_cast %120 : vector<1x1x32xf32> to vector<1x32xf32>
    %122 = vector.broadcast %121 : vector<1x32xf32> to vector<8x32xf32>
    %123 = arith.mulf %119, %122 : vector<8x32xf32>
    %c0_82 = arith.constant 0 : index
    %c0_83 = arith.constant 0 : index
    %c0_84 = arith.constant 0 : index
    %124 = vector.load %arg20[%c0_82, %c0_83, %c0_84] : memref<1x1x32xf32, #tpu.memory_space<vmem>>, vector<1x1x32xf32>
    %125 = vector.shape_cast %124 : vector<1x1x32xf32> to vector<1x32xf32>
    %126 = vector.broadcast %125 : vector<1x32xf32> to vector<8x32xf32>
    %127 = arith.addf %123, %126 : vector<8x32xf32>
    %c0_85 = arith.constant 0 : index
    %c0_86 = arith.constant 0 : index
    %128 = vector.load %arg24[%c0_85, %c0_86] : memref<8x32xf32, #tpu.memory_space<vmem>>, vector<8x32xf32>
    tpu.vector_store %arg24[%c0_85, %c0_86], %127 {strides = array<i32>} : memref<8x32xf32, #tpu.memory_space<vmem>>, vector<8x32xf32>,
    %c1_i32 = arith.constant 1 : i32
    %129 = arith.cmpi eq, %arg1, %c1_i32 : i32
    %130 = arith.extui %129 : i1 to i32
    %c0_i32_87 = arith.constant 0 : i32
    %131 = arith.cmpi ne, %130, %c0_i32_87 : i32
    scf.if %131 {
      %cst_88 = arith.constant dense<0xFF800000> : vector<32xf32>
      %132 = vector.multi_reduction <maximumf>, %127, %cst_88 [0] : vector<8x32xf32> to vector<32xf32>
      %133 = vector.shape_cast %132 : vector<32xf32> to vector<1x32xf32>
      %c0_89 = arith.constant 0 : index
      %c0_90 = arith.constant 0 : index
      %134 = vector.load %arg21[%c0_89, %c0_90] : memref<32x2xf32, #tpu.memory_space<vmem>>, vector<32x2xf32>
      %cst_91 = arith.constant dense<0.000000e+00> : vector<1x2xf32>
      %135 = tpu.matmul %133, %134, %cst_91 {dimension_numbers = #tpu.dot_dimension_numbers<[1], [0], [0], [1], [0, 0, 1, 1], [], []>} : vector<1x32xf32>, vector<32x2xf32>, vector<1x2xf32> -> vector<1x2xf32>
      %c0_92 = arith.constant 0 : index
      %c0_93 = arith.constant 0 : index
      %136 = vector.load %arg22[%c0_92, %c0_93] : memref<1x2xf32, #tpu.memory_space<vmem>>, vector<1x2xf32>
      %137 = arith.addf %135, %136 : vector<1x2xf32>
      %c0_94 = arith.constant 0 : index
      %c0_95 = arith.constant 0 : index
      %c0_96 = arith.constant 0 : index
      %138 = vector.load %arg23[%c0_94, %c0_95, %c0_96] : memref<1x1x2xf32, #tpu.memory_space<vmem>>, vector<1x1x2xf32>
      %139 = vector.shape_cast %138 : vector<1x1x2xf32> to vector<1x2xf32>
      %140 = vector.shape_cast %137 : vector<1x2xf32> to vector<1x1x2xf32>
      tpu.vector_store %arg23[%c0_94, %c0_95, %c0_96], %140 {strides = array<i32>} : memref<1x1x2xf32, #tpu.memory_space<vmem>>, vector<1x1x2xf32>,
    } else {
    }
    return
  }
  func.func @transform_0(%arg0: i32, %arg1: i32) -> (i32, i32, i32) {
    %c0_i32 = arith.constant 0 : i32
    %c0_i32_0 = arith.constant 0 : i32
    %c0_i32_1 = arith.constant 0 : i32
    return %arg0, %c0_i32, %c0_i32_0 : i32, i32, i32
  }
  func.func @transform_1(%arg0: i32, %arg1: i32) -> (i32, i32) {
    %c0_i32 = arith.constant 0 : i32
    %c0_i32_0 = arith.constant 0 : i32
    %c0_i32_1 = arith.constant 0 : i32
    return %c0_i32, %c0_i32_0 : i32, i32
  }
  func.func @transform_2(%arg0: i32, %arg1: i32) -> (i32, i32, i32) {
    %c0_i32 = arith.constant 0 : i32
    %c0_i32_0 = arith.constant 0 : i32
    %c0_i32_1 = arith.constant 0 : i32
    return %arg0, %c0_i32, %c0_i32_0 : i32, i32, i32
  }
  func.func @transform_3(%arg0: i32, %arg1: i32) -> (i32, i32, i32, i32) {
    %c0_i32 = arith.constant 0 : i32
    %c0_i32_0 = arith.constant 0 : i32
    %c0_i32_1 = arith.constant 0 : i32
    %c0_i32_2 = arith.constant 0 : i32
    return %arg1, %c0_i32, %c0_i32_0, %c0_i32_1 : i32, i32, i32, i32
  }
  func.func @transform_4(%arg0: i32, %arg1: i32) -> (i32, i32, i32, i32) {
    %c0_i32 = arith.constant 0 : i32
    %c0_i32_0 = arith.constant 0 : i32
    %c0_i32_1 = arith.constant 0 : i32
    %c0_i32_2 = arith.constant 0 : i32
    return %arg1, %c0_i32, %c0_i32_0, %c0_i32_1 : i32, i32, i32, i32
  }
  func.func @transform_5(%arg0: i32, %arg1: i32) -> (i32, i32, i32, i32) {
    %c0_i32 = arith.constant 0 : i32
    %c0_i32_0 = arith.constant 0 : i32
    %c0_i32_1 = arith.constant 0 : i32
    %c0_i32_2 = arith.constant 0 : i32
    return %arg1, %c0_i32, %c0_i32_0, %c0_i32_1 : i32, i32, i32, i32
  }
  func.func @transform_6(%arg0: i32, %arg1: i32) -> (i32, i32, i32, i32) {
    %c0_i32 = arith.constant 0 : i32
    %c0_i32_0 = arith.constant 0 : i32
    %c0_i32_1 = arith.constant 0 : i32
    %c0_i32_2 = arith.constant 0 : i32
    return %arg1, %c0_i32, %c0_i32_0, %c0_i32_1 : i32, i32, i32, i32
  }
  func.func @transform_7(%arg0: i32, %arg1: i32) -> (i32, i32, i32, i32) {
    %c0_i32 = arith.constant 0 : i32
    %c0_i32_0 = arith.constant 0 : i32
    %c0_i32_1 = arith.constant 0 : i32
    %c0_i32_2 = arith.constant 0 : i32
    return %arg1, %c0_i32, %c0_i32_0, %c0_i32_1 : i32, i32, i32, i32
  }
  func.func @transform_8(%arg0: i32, %arg1: i32) -> (i32, i32, i32, i32) {
    %c0_i32 = arith.constant 0 : i32
    %c0_i32_0 = arith.constant 0 : i32
    %c0_i32_1 = arith.constant 0 : i32
    %c0_i32_2 = arith.constant 0 : i32
    return %arg1, %c0_i32, %c0_i32_0, %c0_i32_1 : i32, i32, i32, i32
  }
  func.func @transform_9(%arg0: i32, %arg1: i32) -> (i32, i32, i32, i32) {
    %c0_i32 = arith.constant 0 : i32
    %c0_i32_0 = arith.constant 0 : i32
    %c0_i32_1 = arith.constant 0 : i32
    %c0_i32_2 = arith.constant 0 : i32
    return %arg1, %c0_i32, %c0_i32_0, %c0_i32_1 : i32, i32, i32, i32
  }
  func.func @transform_10(%arg0: i32, %arg1: i32) -> (i32, i32, i32) {
    %c0_i32 = arith.constant 0 : i32
    %c0_i32_0 = arith.constant 0 : i32
    %c0_i32_1 = arith.constant 0 : i32
    return %arg1, %c0_i32, %c0_i32_0 : i32, i32, i32
  }
  func.func @transform_11(%arg0: i32, %arg1: i32) -> (i32, i32, i32) {
    %c0_i32 = arith.constant 0 : i32
    %c0_i32_0 = arith.constant 0 : i32
    %c0_i32_1 = arith.constant 0 : i32
    return %arg1, %c0_i32, %c0_i32_0 : i32, i32, i32
  }
  func.func @transform_12(%arg0: i32, %arg1: i32) -> (i32, i32, i32) {
    %c0_i32 = arith.constant 0 : i32
    %c0_i32_0 = arith.constant 0 : i32
    %c0_i32_1 = arith.constant 0 : i32
    return %arg1, %c0_i32, %c0_i32_0 : i32, i32, i32
  }
  func.func @transform_13(%arg0: i32, %arg1: i32) -> (i32, i32, i32) {
    %c0_i32 = arith.constant 0 : i32
    %c0_i32_0 = arith.constant 0 : i32
    %c0_i32_1 = arith.constant 0 : i32
    return %arg1, %c0_i32, %c0_i32_0 : i32, i32, i32
  }
  func.func @transform_14(%arg0: i32, %arg1: i32) -> (i32, i32, i32) {
    %c0_i32 = arith.constant 0 : i32
    %c0_i32_0 = arith.constant 0 : i32
    %c0_i32_1 = arith.constant 0 : i32
    return %arg1, %c0_i32, %c0_i32_0 : i32, i32, i32
  }
  func.func @transform_15(%arg0: i32, %arg1: i32) -> (i32, i32, i32) {
    %c0_i32 = arith.constant 0 : i32
    %c0_i32_0 = arith.constant 0 : i32
    %c0_i32_1 = arith.constant 0 : i32
    return %arg1, %c0_i32, %c0_i32_0 : i32, i32, i32
  }
  func.func @transform_16(%arg0: i32, %arg1: i32) -> (i32, i32, i32) {
    %c0_i32 = arith.constant 0 : i32
    %c0_i32_0 = arith.constant 0 : i32
    %c0_i32_1 = arith.constant 0 : i32
    return %arg1, %c0_i32, %c0_i32_0 : i32, i32, i32
  }
  func.func @transform_17(%arg0: i32, %arg1: i32) -> (i32, i32, i32) {
    %c0_i32 = arith.constant 0 : i32
    %c0_i32_0 = arith.constant 0 : i32
    %c0_i32_1 = arith.constant 0 : i32
    return %arg1, %c0_i32, %c0_i32_0 : i32, i32, i32
  }
  func.func @transform_18(%arg0: i32, %arg1: i32) -> (i32, i32, i32) {
    %c0_i32 = arith.constant 0 : i32
    %c0_i32_0 = arith.constant 0 : i32
    %c0_i32_1 = arith.constant 0 : i32
    return %arg1, %c0_i32, %c0_i32_0 : i32, i32, i32
  }
  func.func @transform_19(%arg0: i32, %arg1: i32) -> (i32, i32) {
    %c0_i32 = arith.constant 0 : i32
    %c0_i32_0 = arith.constant 0 : i32
    %c0_i32_1 = arith.constant 0 : i32
    return %c0_i32, %c0_i32_0 : i32, i32
  }
  func.func @transform_20(%arg0: i32, %arg1: i32) -> (i32, i32) {
    %c0_i32 = arith.constant 0 : i32
    %c0_i32_0 = arith.constant 0 : i32
    %c0_i32_1 = arith.constant 0 : i32
    return %c0_i32, %c0_i32_0 : i32, i32
  }
  func.func @transform_21(%arg0: i32, %arg1: i32) -> (i32, i32, i32) {
    %c0_i32 = arith.constant 0 : i32
    %c0_i32_0 = arith.constant 0 : i32
    %c0_i32_1 = arith.constant 0 : i32
    return %arg0, %c0_i32, %c0_i32_0 : i32, i32, i32
  }
}

</mosaic_0001>

<bundles_post_ra>
// kernel: tpu_custom_call.1
= control target key start
LH: loop header
LB: loop body
LE: loop exit
PB: predicated region body
PF: predicated region fallthrough
CT: control target
= control target key end

     0   :  { %s2960_s0 = inlined_call_operand.vmem [shape: f32[2,8,32], index: 0, kind: input, shape index: {}]   ;;  %s2961_s1 = inlined_call_operand.vmem [shape: f32[8,32], index: 1, kind: input, shape index: {}]   ;;  %s2962_s2 = inlined_call_operand.vmem [shape: s32[2,1,8], index: 2, kind: input, shape index: {}]   ;;  %s2963_s3 = inlined_call_operand.vmem [shape: f32[2,4,32,8], index: 3, kind: input, shape index: {}]   ;;  %s2964_s4 = inlined_call_operand.vmem [shape: f32[2,4,1,8], index: 4, kind: input, shape index: {}]   ;;  %s2965_s5 = inlined_call_operand.vmem [shape: f32[2,4,32,8], index: 5, kind: input, shape index: {}]   ;;  %s2966_s6 = inlined_call_operand.vmem [shape: f32[2,4,1,8], index: 6, kind: input, shape index: {}]   ;;  %s2967_s7 = inlined_call_operand.vmem [shape: f32[2,4,32,8], index: 7, kind: input, shape index: {}]   ;;  %s2968_s8 = inlined_call_operand.vmem [shape: f32[2,4,1,8], index: 8, kind: input, shape index: {}]   ;;  %s2969_s9 = inlined_call_operand.vmem [shape: f32[2,4,8,32], index: 9, kind: input, shape index: {}]   ;;  %s2970_s10 = inlined_call_operand.vmem [shape: f32[2,1,32], index: 10, kind: input, shape index: {}]   ;;  %s2971_s11 = inlined_call_operand.vmem [shape: f32[2,1,32], index: 11, kind: input, shape index: {}]   ;;  %s2972_s12 = inlined_call_operand.vmem [shape: f32[2,1,32], index: 12, kind: input, shape index: {}]   ;;  %s2973_s13 = inlined_call_operand.vmem [shape: f32[2,32,64], index: 13, kind: input, shape index: {}]   ;;  %s2974_s14 = inlined_call_operand.vmem [shape: f32[2,1,64], index: 14, kind: input, shape index: {}]   ;;  %s2975_s15 = inlined_call_operand.vmem [shape: f32[2,64,32], index: 15, kind: input, shape index: {}]   ;;  %s2976_s16 = inlined_call_operand.vmem [shape: f32[2,1,32], index: 16, kind: input, shape index: {}]   ;;  %s2977_s17 = inlined_call_operand.vmem [shape: f32[2,1,32], index: 17, kind: input, shape index: {}]   ;;  %s2978_s18 = inlined_call_operand.vmem [shape: f32[2,1,32], index: 18, kind: input, shape index: {}]   ;;  %s2979_s19 = inlined_call_operand.vmem [shape: f32[32,2], index: 19, kind: input, shape index: {}]   ;;  %s2980_s20 = inlined_call_operand.vmem [shape: f32[1,2], index: 20, kind: input, shape index: {}]   ;;  %s2981_s21 = inlined_call_operand.hbm [shape: f32[2,1,2], index: 21, kind: output, shape index: {}]  }
   0x1   :  { %2999 = sst [smem:[#allocation21_spill]] %s2960_s0 }
   0x2   :  { %3000 = sst [smem:[#allocation22_spill]] %s2961_s1 }
   0x3   :  { %3001 = sst [smem:[#allocation23_spill]] %s2962_s2 }
   0x4   :  { %3002 = sst [smem:[#allocation24_spill]] %s2963_s3 }
   0x5   :  { %3003 = sst [smem:[#allocation25_spill]] %s2964_s4 }
   0x6   :  { %3004 = sst [smem:[#allocation26_spill]] %s2965_s5 }
   0x7   :  { %3005 = sst [smem:[#allocation27_spill]] %s2966_s6 }
   0x8   :  { %3006 = sst [smem:[#allocation28_spill]] %s2967_s7 }
   0x9   :  { %3007 = sst [smem:[#allocation29_spill]] %s2968_s8 }
   0xa   :  { %3008 = sst [smem:[#allocation30_spill]] %s2969_s9 }
   0xb   :  { %3009 = sst [smem:[#allocation31_spill]] %s2971_s11 }
   0xc   :  { %3010 = sst [smem:[#allocation32_spill]] %s2972_s12 }
   0xd   :  { %3011 = sst [smem:[#allocation33_spill]] %s2973_s13 }
   0xe   :  { %3012 = sst [smem:[#allocation34_spill]] %s2975_s15 }
   0xf   :  { %3013 = sst [smem:[#allocation35_spill]] %s2977_s17 }
  0x10   :  { %3014 = sst [smem:[#allocation36_spill]] %s2978_s18 }
  0x11   :  { %3015 = sst [smem:[#allocation37_spill]] %s2979_s19 }
  0x12   :  { %3016 = sst [smem:[#allocation38_spill]] %s2980_s20 }
  0x13   :  { %3017 = sst [smem:[#allocation39_spill]] %s2981_s21 }
  0x14   :  { %26 = vsyncpa [#allocation4], 0 }
  0x15   :  { %28 = vsyncpa [#allocation4 + $0x1], 0  ;;  %s2534_s2 = smov 0   ;;  %s2536_s25 = smov 0  }
  0x16   :  { %s2538_s26 = smov 0   ;;  %s2540_s27 = smov 0  }
  0x17   :  { %s2542_s3 = smov 0   ;;  %s2544_s28 = smov 0  }
  0x18   :  { %s2546_s29 = smov 0   ;;  %s2548_s0 = smov 0  }
  0x19 LB: > { %3018 = sst [smem:[#allocation6_spill]] %s2392_s2  ;;  %s2150_s4 = sadd.s32 4294967295, %s2420_s0   ;;  %s2420_s0 = sphi %s2548_s0, %s34_s0   ;;  %s2416_s29 = sphi %s2546_s29, %s3081_s29   ;;  %s2412_s28 = sphi %s2544_s28, %s3080_s28   ;;  %s2408_s3 = sphi %s2542_s3, %s3079_s3   ;;  %s2404_s27 = sphi %s2540_s27, %s3078_s27   ;;  %s2400_s26 = sphi %s2538_s26, %s3077_s26   ;;  %s2396_s25 = sphi %s2536_s25, %s3083_s25   ;;  %s2392_s2 = sphi %s2534_s2, %s3082_s2  }
  0x1a   : > { %3019 = sst [smem:[#allocation7_spill]] %s2400_s26  ;;  %s2151_s30 = sadd.s32 4294967294, %s2420_s0  }
  0x1b   : > { %3020 = sst [smem:[#allocation8_spill]] %s2404_s27  ;;  %s43_s5 = sadd.s32 1, %s2412_s28 }
  0x1c   : > { %3021 = sst [smem:[#allocation9_spill]] %s2408_s3  ;;  %p44_p0 = scmp.ge.s32.totalorder %s43_s5, 2 }
  0x1d   : > { %3022 = sst [smem:[#allocation10_spill]] %s2412_s28  ;;  %s46_s22 = sadd.s32 1, %s2416_s29 }
  0x1e   : > { %3023 = sst [smem:[#allocation11_spill]] %s2416_s29  ;;  %p594_p1 = scmp.ne.s32.totalorder %s2400_s26, %s2396_s25 }
  0x1f   : > { %3024 = sst [smem:[#allocation12_spill]] %s2420_s0  ;;  %p595_p2 = scmp.eq.s32.totalorder %s2150_s4, 3 }
  0x20   : > { %s3085_s5 = smov (%p44_p0, %s43_s5), 0  ;;  %s3087_s22 = smov (!%p44_p0, %s46_s22), %s2416_s29 }
  0x21   : > { %3025 = sst [smem:[#allocation13_spill]] %s3085_s5  ;;  %p2583_p3 = por %p595_p2, %p594_p1 }
  0x22   : > { %p600_p4 = scmp.ne.s32.totalorder %s2396_s25, %s2392_s2  ;;  %p48_p5 = scmp.ge.s32.totalorder %s3087_s22, 2 }
  0x23   : > { %s3026_s23 = scalar_select %p2583_p3, 1, 0 }
  0x24   : > { %p601_p6 = scmp.eq.s32.totalorder %s2151_s30, 3  ;;  %p2154_p7 = scmp.ge.s32.totalorder %s2420_s0, 1 }
  0x25   : > { %3027 = sst [smem:[#allocation14_spill]] %s3026_s23  ;;  %p752_p8 = scmp.lt.s32.totalorder %s2420_s0, 5 }
  0x26   : > { %s3089_s22 = smov (%p48_p5, %s3087_s22), 0  ;;  %p2593_p9 = por %p601_p6, %p600_p4 }
  0x27   : > { %3028 = sst [smem:[#allocation15_spill]] %s3089_s22  ;;  %p753_p10 = pnand %p2154_p7, %p752_p8 }
  0x28   : > { %s3029_s1 = scalar_select %p2593_p9, 1, 0 }
  0x29   : > { %s581_s24 = ssub.s32 %s2416_s29, %s3089_s22  ;;  %s584_s4 = sadd.s32 1, %s2400_s26 }
  0x2a   : > { %3030 = sst [smem:[#allocation16_spill]] %s3029_s1  ;;  %p582_p11 = scmp.eq.s32.totalorder %s581_s24, 0 }
  0x2b   : > { %756 = sbr.rel (%p753_p10) target bundleno = 1886 (0x75e), region = 104 }
  0x2c   : > { %s2601_s5 = scalar_select %p582_p11, %s2400_s26, %s584_s4  }
  0x2e   : > { %3031 = sst [smem:[#allocation17_spill]] %s2601_s5 }
  0x30   : > { %p876_p12 = scmp.lt.s32.totalorder %s2408_s3, 1  ;;  %p883_p13 = scmp.lt.s32.totalorder %s2404_s27, 1 }
  0x31   : > { %s3034_s2 = sld [smem:[#allocation21_spill]]  ;;  %s3050_s4 = sand.u32 1, %s2396_s25  }
  0x32   : > { %s2607_s28 = scalar_select %p876_p12, %s2408_s3, 1 }
  0x33   : > { %s2610_s1 = scalar_select %p883_p13, %s2404_s27, 1 }
  0x34   : > { %3032 = sst [smem:[#allocation18_spill]] %s2607_s28  ;;  %s2155_s24 = sshll.u32 %s2607_s28, 3 }
  0x35   : > { %s2206_s23 = sshll.u32 %s2610_s1, 7  ;;  %s3035_s20 = sld [smem:[#allocation24_spill]] }
  0x36   : > { %s2158_s27 = sshll.u32 %s2610_s1, 2  ;;  %s3036_s15 = sld [smem:[#allocation25_spill]] }
  0x37   : > { %s879_s0 = scalar_lea.vmem %s3034_s2, %s2155_s24  ;;  %s3038_s26 = sld [smem:[#allocation26_spill]] }
  0x38   : > { %s3039_s6 = sld [smem:[#allocation27_spill]]  ;;  %s2209_s29 = sshll.u32 %s2610_s1, 5 }
  0x39   : > { %s3041_s7 = sld [smem:[#allocation28_spill]] }
  0x3a   : > { %s3042_s8 = sld [smem:[#allocation29_spill]] }
  0x3b   : > { %s2624_s19 = scalar_lea.vmem %s3035_s20, %s2206_s23  ;;  %s3043_s9 = sld [smem:[#allocation30_spill]] }
  0x3c   : > { %s2630_s22 = scalar_lea.vmem %s3036_s15, %s2158_s27  ;;  %s3046_s13 = sld [smem:[#allocation33_spill]] }
  0x3d   : > { %3037 = sst [smem:[#allocation19_spill]] %s2630_s22  ;;  %s2635_s2 = scalar_lea.vmem %s3038_s26, %s2206_s23 }
  0x3e   : > { %s2640_s21 = scalar_lea.vmem %s3039_s6, %s2158_s27  ;;  %s939_s6 = scalar_lea.vmem %s2976_s16, %s2610_s1 }
  0x3f   : > { %3040 = sst [smem:[#allocation20_spill]] %s2640_s21  ;;  %s2645_s5 = scalar_lea.vmem %s3041_s7, %s2206_s23 }
  0x40   : > { %s2650_s18 = scalar_lea.vmem %s3042_s8, %s2158_s27  ;;  %s3047_s23 = sld [smem:[#allocation34_spill]] }
  0x41   : > { %s2656_s28 = scalar_lea.vmem %s3043_s9, %s2209_s29  ;;  %s2211_s9 = sshll.u32 %s2610_s1, 6 }
  0x42   : > { %s2673_s7 = scalar_lea.vmem %s3046_s13, %s2209_s29  ;;  %s3048_s17 = sld [smem:[#allocation35_spill]] }
  0x43   : > { %s3049_s13 = sld [smem:[#allocation36_spill]]  ;;  %s2699_s26 = scalar_lea.vmem [#allocation3], %s3050_s4 }
  0x44   : > { %s3051_s8 = sld [smem:[#allocation8_spill]] }
  0x46   : > { %s2687_s11 = scalar_lea.vmem %s3047_s23, %s2211_s9 }
  0x48   : > { %s942_s27 = scalar_lea.vmem %s3048_s17, %s2610_s1 }
  0x49   : > { %s945_s12 = scalar_lea.vmem %s3049_s13, %s2610_s1 }
  0x4a   : > { %p2171_p0 = scmp.ne.s32.totalorder %s3051_s8, 0 }
  0x4b   : > { %s3052_s22 = sld [smem:[#allocation22_spill]] (!%p2171_p0) }
  0x4c   : > { %949 = sbr.rel (%p2171_p0) target bundleno = 87 (0x57), region = 108 }
  0x51   : > { %v950_v0 = vld [vmem:[%s879_s0] sm:$0xff]  ;;  %vm954_vm0 = vcmask 261120  }
  0x52   : > { %v952_v1 = vld [vmem:[%s3052_s22] sm:$0xff]  ;;  %v951_v2 = vmul.f32 5.656854, %v950_v0 }
  0x54   : > { %v953_v3 = vadd.f32 %v952_v1, %v951_v2 }
  0x56   : > { %955 = vst.msk [vmem:[#allocation2] sm:$0xff] %vm954_vm0, %v953_v3 }
  0x57 PF: > { %v963_v4 = vld [vmem:[%s2624_s19 + $0x18] sm:$0xff]  ;;  %v962_v6 = vld [vmem:[%s2624_s19 + $0x10] sm:$0xff]  ;;  %v961_v8 = vld [vmem:[%s2624_s19 + $0x8] sm:$0xff]  ;;  %vm992_vm1 = vcmask 261120   ;;  %s3053_s8 = sld [smem:[#allocation19_spill]]  ;;  %vm1307_vm2 = vcmask 64512   ;;  %s3058_s23 = scalar_lea.vmem %s2970_s10, %s2610_s1 }
  0x58   : > { %v967_v5 = vld [vmem:[%s2624_s19 + $0x38] sm:$0xff]  ;;  %1008 = vmatpush.msra.mxu0 %v963_v4  ;;  %v966_v7 = vld [vmem:[%s2624_s19 + $0x30] sm:$0xff]  ;;  %v965_v9 = vld [vmem:[%s2624_s19 + $0x28] sm:$0xff]  ;;  %s3054_s9 = sld [smem:[#allocation20_spill]]  ;;  %s3063_s22 = scalar_lea.vmem %s2974_s14, %s2610_s1 }
  0x59   : > { %1028 = vmatpush.msra.mxu2 %v967_v5  ;;  %v1083_v10 = vld [vmem:[%s2635_s2 + $0x38] sm:$0xff]  ;;  %v1082_v12 = vld [vmem:[%s2635_s2 + $0x30] sm:$0xff]  ;;  %v960_v13 = vld [vmem:[%s2624_s19] sm:$0xff]  ;;  %s3055_s13 = sld [smem:[#allocation18_spill]] }
  0x5a   : > { %1009 = vmatpush.msra.mxu0 %v962_v6  ;;  %v975_v11 = vld [vmem:[%s2624_s19 + $0x78] sm:$0xff]  ;;  %1140 = vmatpush.msra.mxu1 %v1083_v10  ;;  %v964_v14 = vld [vmem:[%s2624_s19 + $0x20] sm:$0xff]  ;;  %v974_v15 = vld [vmem:[%s2624_s19 + $0x70] sm:$0xff]  ;;  %s3059_s21 = sld [smem:[#allocation31_spill]] }
  0x5b   : > { %1029 = vmatpush.msra.mxu2 %v966_v7  ;;  %1068 = vmatpush.msra.mxu3 %v975_v11  ;;  %v971_v17 = vld [vmem:[%s2624_s19 + $0x58] sm:$0xff]  ;;  %v1081_v19 = vld [vmem:[%s2635_s2 + $0x28] sm:$0xff]  ;;  %v970_v21 = vld [vmem:[%s2624_s19 + $0x50] sm:$0xff]  ;;  %s3061_s15 = sld [smem:[#allocation32_spill]] }
  0x5c   : > { %1010 = vmatpush.msra.mxu0 %v961_v8  ;;  %1141 = vmatpush.msra.mxu1 %v1082_v12  ;;  %v1079_v18 = vld [vmem:[%s2635_s2 + $0x18] sm:$0xff]  ;;  %v973_v20 = vld [vmem:[%s2624_s19 + $0x68] sm:$0xff]  ;;  %v1078_v22 = vld [vmem:[%s2635_s2 + $0x10] sm:$0xff] }
  0x5d   : > { %1030 = vmatpush.msra.mxu2 %v965_v9  ;;  %v2717_v16 = vld [vmem:[#allocation2] sm:$0xff]  ;;  %1069 = vmatpush.msra.mxu3 %v974_v15  ;;  %v969_v25 = vld [vmem:[%s2624_s19 + $0x48] sm:$0xff]  ;;  %v1091_v29 = vld [vmem:[%s2635_s2 + $0x78] sm:$0xff] }
  0x5e   : > { %1011 = vmatpush.msra.mxu0 %v960_v13  ;;  %v1080_v23 = vld [vmem:[%s2635_s2 + $0x20] sm:$0xff]  ;;  %1142 = vmatpush.msra.mxu1 %v1081_v19  ;;  %v1077_v26 = vld [vmem:[%s2635_s2 + $0x8] sm:$0xff]  ;;  %v1087_v30 = vld [vmem:[%s2635_s2 + $0x58] sm:$0xff] }
  0x5f   : > { %1031 = vmatpush.msra.mxu2 %v964_v14  ;;  %2172 = vmatmul.msk.f32.vlgmr.msra.gmra.mxu0 %vm992_vm1, %v2717_v16  ;;  %v972_v24 = vld [vmem:[%s2624_s19 + $0x60] sm:$0xff]  ;;  %v1195_v31 = vld [vmem:[%s2645_s5 + $0x38] sm:$0xff]  ;;  %v1090_v33 = vld [vmem:[%s2635_s2 + $0x70] sm:$0xff] }
  0x60   : > { %2173 = vmatmul.msk.f32.vlgmr.msra.gmra.mxu2 %vm992_vm1, %v2717_v16  ;;  %1120 = vmatpush.msrb.mxu0 %v1079_v18  ;;  %v968_v27 = vld [vmem:[%s2624_s19 + $0x40] sm:$0xff]  ;;  %v1191_v32 = vld [vmem:[%s2645_s5 + $0x18] sm:$0xff]  ;;  %v1086_v34 = vld [vmem:[%s2635_s2 + $0x50] sm:$0xff]  ;;  %s3060_s20 = scalar_lea.vmem %s3059_s21, %s2610_s1 }
  0x61   : > { %1048 = vmatpush.msrb.mxu2 %v971_v17  ;;  %1070 = vmatpush.msra.mxu3 %v973_v20  ;;  %v1076_v28 = vld [vmem:[%s2635_s2] sm:$0xff]  ;;  %v1194_v35 = vld [vmem:[%s2645_s5 + $0x30] sm:$0xff]  ;;  %v1089_v36 = vld [vmem:[%s2635_s2 + $0x68] sm:$0xff]  ;;  %s3062_s4 = scalar_lea.vmem %s3061_s15, %s2610_s1 }
  0x62   : > { %1121 = vmatpush.msrb.mxu0 %v1078_v22  ;;  %1143 = vmatpush.msra.mxu1 %v1080_v23  ;;  %v1085_v37 = vld [vmem:[%s2635_s2 + $0x48] sm:$0xff]  ;;  %v1088_v38 = vld [vmem:[%s2635_s2 + $0x60] sm:$0xff]  ;;  %v1190_v41 = vld [vmem:[%s2645_s5 + $0x10] sm:$0xff] }
  0x63   : > { %1049 = vmatpush.msrb.mxu2 %v970_v21  ;;  %1071 = vmatpush.msra.mxu3 %v972_v24  ;;  %v1084_v39 = vld [vmem:[%s2635_s2 + $0x40] sm:$0xff]  ;;  %v1193_v40 = vld [vmem:[%s2645_s5 + $0x28] sm:$0xff]  ;;  %v1203_v45 = vld [vmem:[%s2645_s5 + $0x78] sm:$0xff] }
  0x64   : > { %1122 = vmatpush.msrb.mxu0 %v1077_v26  ;;  %2177 = vmatmul.msk.f32.vlgmr.msra.gmra.mxu1 %vm992_vm1, %v2717_v16  ;;  %v1192_v42 = vld [vmem:[%s2645_s5 + $0x20] sm:$0xff]  ;;  %v1189_v43 = vld [vmem:[%s2645_s5 + $0x8] sm:$0xff]  ;;  %v1199_v46 = vld [vmem:[%s2645_s5 + $0x58] sm:$0xff] }
  0x65   : > { %1050 = vmatpush.msrb.mxu2 %v969_v25  ;;  %2175 = vmatmul.msk.f32.vlgmr.msra.gmra.mxu3 %vm992_vm1, %v2717_v16  ;;  %v1188_v44 = vld [vmem:[%s2645_s5] sm:$0xff]  ;;  %v1202_v47 = vld [vmem:[%s2645_s5 + $0x70] sm:$0xff]  ;;  %v1201_v49 = vld [vmem:[%s2645_s5 + $0x68] sm:$0xff] }
  0x66   : > { %1123 = vmatpush.msrb.mxu0 %v1076_v28  ;;  %1180 = vmatpush.msrb.mxu3 %v1091_v29  ;;  %v1198_v48 = vld [vmem:[%s2645_s5 + $0x50] sm:$0xff]  ;;  %v1197_v50 = vld [vmem:[%s2645_s5 + $0x48] sm:$0xff]  ;;  %v1200_v51 = vld [vmem:[%s2645_s5 + $0x60] sm:$0xff] }
  0x67   : > { %1051 = vmatpush.msrb.mxu2 %v968_v27  ;;  %2176 = vmatmul.msk.f32.vlgmr.msrb.gmra.mxu0 %vm992_vm1, %v2717_v16  ;;  %v1196_v52 = vld [vmem:[%s2645_s5 + $0x40] sm:$0xff]  ;;  %s3056_s5 = sld [smem:[#allocation23_spill]] }
  0x68   : > { %2174 = vmatmul.msk.f32.vlgmr.msrb.gmra.mxu2 %vm992_vm1, %v2717_v16  ;;  %1252 = vmatpush.msrb.mxu1 %v1195_v31  ;;  %v2285_v54 = vld [vmem:[%s3053_s8] ss:$0 sm:$0xff]  ;;  %v2286_v55 = vld [vmem:[%s3054_s9 + $0x1] ss:$0 sm:$0xff]  ;;  %v2289_v5 = vld [vmem:[%s3053_s8 + $0x3] ss:$0 sm:$0xff] }
  0x69   : > { %1160 = vmatpush.msra.mxu2 %v1087_v30  ;;  %1232 = vmatpush.msra.mxu0 %v1191_v32  ;;  %v2287_v56 = vld [vmem:[%s3053_s8 + $0x1] ss:$0 sm:$0xff]  ;;  %v2288_v57 = vld [vmem:[%s3054_s9] ss:$0 sm:$0xff]  ;;  %v2290_v6 = vld [vmem:[%s3053_s8 + $0x2] ss:$0 sm:$0xff] }
  0x6a   : > { %1181 = vmatpush.msrb.mxu3 %v1090_v33  ;;  %1253 = vmatpush.msrb.mxu1 %v1194_v35  ;;  %v2291_v7 = vld [vmem:[%s3054_s9 + $0x3] ss:$0 sm:$0xff]  ;;  %v2292_v8 = vld [vmem:[%s3054_s9 + $0x2] ss:$0 sm:$0xff]  ;;  %v2293_v18 = vld [vmem:[%s2650_s18 + $0x1] ss:$0 sm:$0xff] }
  0x6b   : > { %1161 = vmatpush.msra.mxu2 %v1086_v34  ;;  %1233 = vmatpush.msra.mxu0 %v1190_v41  ;;  %v2294_v20 = vld [vmem:[%s2650_s18] ss:$0 sm:$0xff]  ;;  %v2295_v24 = vld [vmem:[%s2650_s18 + $0x3] ss:$0 sm:$0xff]  ;;  %v2296_v25 = vld [vmem:[%s2650_s18 + $0x2] ss:$0 sm:$0xff] }
  0x6c   : > { %1182 = vmatpush.msrb.mxu3 %v1089_v36  ;;  %1254 = vmatpush.msrb.mxu1 %v1193_v40  ;;  %v2422_v31 = vmov 0.0  }
  0x6d   : > { %1162 = vmatpush.msra.mxu2 %v1085_v37  ;;  %1234 = vmatpush.msra.mxu0 %v1189_v43  ;;  %s3057_s2 = scalar_lea.vmem %s3056_s5, %s3055_s13 }
  0x6e   : > { %1183 = vmatpush.msrb.mxu3 %v1088_v38  ;;  %1255 = vmatpush.msrb.mxu1 %v1192_v42  ;;  %v957_v30 = vld [vmem:[%s3057_s2] sm:$0x1]  ;;  %s3066_s2 = sld [smem:[#allocation8_spill]] }
  0x6f   : > { %1163 = vmatpush.msra.mxu2 %v1084_v39  ;;  %2179 = vmatmul.msk.f32.vlgmr.msrb.gmra.mxu3 %vm992_vm1, %v2717_v16  ;;  %vm958_vm3 = vcmp.ne.s32.totalorder %v957_v30, 0 }
  0x70   : > { %2178 = vmatmul.msk.f32.vlgmr.msra.gmra.mxu2 %vm992_vm1, %v2717_v16  ;;  %2181 = vmatmul.msk.f32.vlgmr.msrb.gmra.mxu1 %vm992_vm1, %v2717_v16  ;;  %v959_v32 = vsel %vm958_vm3, -1e+30, %v2422_v31 }
  0x71   : > { %1235 = vmatpush.msra.mxu0 %v1188_v44  ;;  %1292 = vmatpush.msra.mxu3 %v1203_v45  ;;  %v1305_v33 = vperm.slane %v959_v32, 0 }
  0x72   : > { %2180 = vmatmul.msk.f32.vlgmr.msra.gmra.mxu0 %vm992_vm1, %v2717_v16  ;;  %1272 = vmatpush.msrb.mxu2 %v1199_v46 }
  0x73   : > { %1293 = vmatpush.msra.mxu3 %v1202_v47 }
  0x74   : > { %1273 = vmatpush.msrb.mxu2 %v1198_v48  ;;  %p2202_p1 = scmp.ne.s32.totalorder %s3066_s2, 1 }
  0x75   : > { %1294 = vmatpush.msra.mxu3 %v1201_v49  ;;  %s3068_s29 = sld [smem:[#allocation38_spill]] (!%p2202_p1) }
  0x76   : > { %1274 = vmatpush.msrb.mxu2 %v1197_v50 }
  0x77   : > { %1295 = vmatpush.msra.mxu3 %v1200_v51 }
  0x78   : > { %1275 = vmatpush.msrb.mxu2 %v1196_v52  ;;  %2183 = vmatmul.msk.f32.vlgmr.msra.gmra.mxu3 %vm992_vm1, %v2717_v16 }
  0x79   : > { %2182 = vmatmul.msk.f32.vlgmr.msrb.gmra.mxu2 %vm992_vm1, %v2717_v16 }
  0xdc   : > { %v1013_v53 = vpop.f32.mrf.mxu0 }
  0xdd   : > { %v1014_v58 = vadd.f32 %v2285_v54, %v1013_v53 }
  0xdf   : > { %v1300_v2 = vmul.f32 0.35355338, %v1014_v58 }
  0xe1   : > { %v1145_v59 = vpop.f32.mrf.mxu1 }
  0xe2   : > { %v1146_v61 = vadd.f32 %v2286_v55, %v1145_v59 }
  0xe3   : > { %v1033_v60 = vpop.f32.mrf.mxu2 }
  0xe4   : > { %v1034_v62 = vadd.f32 %v2287_v56, %v1033_v60  ;;  %v1125_v63 = vpop.f32.mrf.mxu0  ;;  %2186 = vmatpush.xpose.msk.msra.mxu1 %vm1307_vm2, %v1146_v61 }
  0xe5   : > { %v1126_v1 = vadd.f32 %v2288_v57, %v1125_v63 }
  0xe6   : > { %v1301_v0 = vmul.f32 0.35355338, %v1034_v62 }
  0xe7   : > { %2184 = vmatpush.xpose.msk.msrb.mxu0 %vm1307_vm2, %v1126_v1 }
  0xe8   : > { %2187 = vmatmul.msk.f32.vlgmr.msra.gmra.mxu1 %vm1307_vm2, %v1301_v0  ;;  %v1073_v3 = vpop.f32.mrf.mxu3 }
  0xe9   : > { %v1074_v9 = vadd.f32 %v2289_v5, %v1073_v3 }
  0xea   : > { %2185 = vmatmul.msk.f32.vlgmr.msrb.gmra.mxu0 %vm1307_vm2, %v1300_v2 }
  0xeb   : > { %v1053_v4 = vpop.f32.mrf.mxu2  ;;  %v1303_v15 = vmul.f32 0.35355338, %v1074_v9 }
  0xec   : > { %v1054_v10 = vadd.f32 %v2290_v6, %v1053_v4 }
  0xed   : > { %v1257_v19 = vpop.f32.mrf.mxu1 }
  0xee   : > { %v1302_v17 = vmul.f32 0.35355338, %v1054_v10  ;;  %v1258_v21 = vadd.f32 %v2293_v18, %v1257_v19 }
  0xef   : > { %v1237_v22 = vpop.f32.mrf.mxu0 }
  0xf0   : > { %1549 = vmatpush.msrb.mxu1 %v1258_v21  ;;  %v1238_v23 = vadd.f32 %v2294_v20, %v1237_v22 }
  0xf2   : > { %v1185_v11 = vpop.f32.mrf.mxu3  ;;  %1526 = vmatpush.msra.mxu0 %v1238_v23 }
  0xf3   : > { %v1165_v12 = vpop.f32.mrf.mxu2  ;;  %v1186_v13 = vadd.f32 %v2291_v7, %v1185_v11 }
  0xf4   : > { %v1166_v14 = vadd.f32 %v2292_v8, %v1165_v12 }
  0xf5   : > { %2190 = vmatpush.xpose.msk.msrb.mxu3 %vm1307_vm2, %v1186_v13 }
  0xf6   : > { %2188 = vmatpush.xpose.msk.msra.mxu2 %vm1307_vm2, %v1166_v14 }
  0xf8   : > { %2191 = vmatmul.msk.f32.vlgmr.msrb.gmra.mxu3 %vm1307_vm2, %v1303_v15 }
  0xf9   : > { %2189 = vmatmul.msk.f32.vlgmr.msra.gmra.mxu2 %vm1307_vm2, %v1302_v17 }
  0xfb   : > { %v1297_v26 = vpop.f32.mrf.mxu3 }
  0xfc   : > { %v1298_v27 = vadd.f32 %v2295_v24, %v1297_v26  ;;  %v1277_v28 = vpop.f32.mrf.mxu2 }
  0xfd   : > { %v1278_v29 = vadd.f32 %v2296_v25, %v1277_v28 }
  0xfe   : > { %1595 = vmatpush.msra.mxu3 %v1298_v27 }
  0xff   : > { %1572 = vmatpush.msrb.mxu2 %v1278_v29 }
 0x165   : > { %v1357_v37 = vpop.f32.mrf.mxu1 }
 0x166   : > { %v1358_v38 = vadd.f32 %v1357_v37, %v1305_v33 }
 0x167   : > { %v1331_v34 = vpop.f32.mrf.mxu0 }
 0x168   : > { %v1332_v35 = vadd.f32 %v1331_v34, %v1305_v33  ;;  %v1415_v39 = vsel %vm1307_vm2, %v1358_v38, -inf }
 0x16a   : > { %v1412_v36 = vsel %vm1307_vm2, %v1332_v35, -inf }
 0x16b   : > { %1413 = vmax.xlane.f32.xlu1 %v1412_v36 }
 0x173   : > { %1416 = vmax.xlane.f32.xlu1 %v1415_v39 }
 0x17b   : > { %v1409_v43 = vpop.f32.mrf.mxu3 }
 0x17c   : > { %v1383_v40 = vpop.f32.mrf.mxu2  ;;  %v1410_v44 = vadd.f32 %v1409_v43, %v1305_v33 }
 0x17d   : > { %v1384_v41 = vadd.f32 %v1383_v40, %v1305_v33 }
 0x17e   : > { %v1421_v45 = vsel %vm1307_vm2, %v1410_v44, -inf }
 0x17f   : > { %v1418_v42 = vsel %vm1307_vm2, %v1384_v41, -inf }
 0x180   : > { %1419 = vmax.xlane.f32.xlu0 %v1418_v42 }
 0x188   : > { %1422 = vmax.xlane.f32.xlu0 %v1421_v45 }
 0x1de   : > { %v1414_v46 = vpop.xlane.xlu1 %1413 }
 0x1df   : > { %v1424_v47 = vsub.f32 %v1332_v35, %v1414_v46 }
 0x1e1   : > { %v1428_v48 = vmul.f32 1.442695, %v1424_v47 }
 0x1e3   : > { %2304 = vpow2.f32 %v1428_v48 }
 0x1e6   : > { %v1417_v49 = vpop.xlane.xlu1 %1416 }
 0x1e7   : > { %v1425_v50 = vsub.f32 %v1358_v38, %v1417_v49 }
 0x1e9   : > { %v2305_v51 = vpop.eup %2304  ;;  %v1430_v52 = vmul.f32 1.442695, %v1425_v50 }
 0x1ea   : > { %v1436_v53 = vsel %vm1307_vm2, %v2305_v51, 0.0 }
 0x1eb   : > { %2306 = vpow2.f32 %v1430_v52  ;;  %1437 = vadd.xlane.f32.xlu0 %v1436_v53  ;;  %v1601_v52 = vld [vmem:[%s2656_s28 + $0x8] sm:$0xff]  ;;  %v1602_v53 = vld [vmem:[%s2656_s28 + $0x10] sm:$0xff] }
 0x1ec   : > { %1645 = vmatpush.msra.mxu1 %v1601_v52  ;;  %1668 = vmatpush.msra.mxu2 %v1602_v53  ;;  %v2301_v53 = vld [vmem:[%s939_s6] ss:$0 sm:$0xff] }
 0x1f1   : > { %v2307_v54 = vpop.eup %2306 }
 0x1f2   : > { %v1439_v56 = vsel %vm1307_vm2, %v2307_v54, 0.0 }
 0x1f3   : > { %v1420_v55 = vpop.xlane.xlu0 %1419  ;;  %1440 = vadd.xlane.f32.xlu1 %v1439_v56 }
 0x1f4   : > { %v1426_v57 = vsub.f32 %v1384_v41, %v1420_v55 }
 0x1f6   : > { %v1432_v58 = vmul.f32 1.442695, %v1426_v57 }
 0x1f8   : > { %2308 = vpow2.f32 %v1432_v58 }
 0x1fb   : > { %v1423_v59 = vpop.xlane.xlu0 %1422 }
 0x1fc   : > { %v1427_v60 = vsub.f32 %v1410_v44, %v1423_v59 }
 0x1fe   : > { %v2810_v61 = vpop.eup %2308  ;;  %v1434_v62 = vmul.f32 1.442695, %v1427_v60 }
 0x1ff   : > { %v1442_v63 = vsel %vm1307_vm2, %v2810_v61, 0.0 }
 0x200   : > { %2310 = vpow2.f32 %v1434_v62  ;;  %1443 = vadd.xlane.f32.xlu2 %v1442_v63 }
 0x206   : > { %v2814_v0 = vpop.eup %2310 }
 0x207   : > { %v1445_v1 = vsel %vm1307_vm2, %v2814_v0, 0.0 }
 0x208   : > { %1446 = vadd.xlane.f32.xlu2 %v1445_v1 }
 0x25e   : > { %v1438_v2 = vpop.xlane.xlu0 %1437 }
 0x25f   : > { %2312 = vrcp.f32 %v1438_v2  ;;  %v1459_v7 = vand.u32 2147483648, %v1438_v2  ;;  %v1457_v9 = vand.u32 2147483647, %v1438_v2  ;;  %vm1453_vm5 = vweird.f32 %v1438_v2 }
 0x261   : > { %v1460_v12 = vor.u32 1.1754944e-38, %v1459_v7  ;;  %vm1458_vm7 = vcmp.eq.f32.partialorder %v1457_v9, 8.507059e+37 }
 0x265   : > { %v2313_v3 = vpop.eup %2312 }
 0x266   : > { %v1449_v4 = vmul.f32 %v2313_v3, %v1438_v2  ;;  %v1441_v5 = vpop.xlane.xlu1 %1440  ;;  %vm1454_vm4 = vweird.f32 %v2313_v3 }
 0x267   : > { %2314 = vrcp.f32 %v1441_v5  ;;  %vm1455_vm6 = vmor %vm1453_vm5, %vm1454_vm4  ;;  %v1474_v19 = vand.u32 2147483648, %v1441_v5  ;;  %v1472_v21 = vand.u32 2147483647, %v1441_v5  ;;  %vm1468_vm9 = vweird.f32 %v1441_v5 }
 0x268   : > { %v1450_v6 = vsub.f32 1.0, %v1449_v4  ;;  %v2297_v4 = vld [vmem:[%s3058_s23] ss:$0 sm:$0xff]  ;;  %s3067_s23 = sld [smem:[#allocation37_spill]] (!%p2202_p1) }
 0x269   : > { %v1475_v24 = vor.u32 1.1754944e-38, %v1474_v19  ;;  %vm1473_vm11 = vcmp.eq.f32.partialorder %v1472_v21, 8.507059e+37 }
 0x26a   : > { %v1451_v8 = vmul.f32 %v2313_v3, %v1450_v6 }
 0x26c   : > { %v1452_v10 = vadd.f32 %v2313_v3, %v1451_v8 }
 0x26d   : > { %v2315_v11 = vpop.eup %2314 }
 0x26e   : > { %v1456_v13 = vsel %vm1455_vm6, %v2313_v3, %v1452_v10  ;;  %v1464_v14 = vmul.f32 %v2315_v11, %v1441_v5  ;;  %vm1469_vm8 = vweird.f32 %v2315_v11  ;;  %v2423_v10 = vmov 32.0  }
 0x26f   : > { %v1461_v15 = vsel %vm1458_vm7, %v1460_v12, %v1456_v13  ;;  %vm1470_vm10 = vmor %vm1468_vm9, %vm1469_vm8  ;;  %vm1792_vm9 = vcmask 523264  }
 0x270   : > { %v1465_v17 = vsub.f32 1.0, %v1464_v14  ;;  %v1462_v18 = vmul.f32 %v2305_v51, %v1461_v15  ;;  %v1600_v51 = vld [vmem:[%s2656_s28] sm:$0xff] }
 0x271   : > { %1622 = vmatpush.msrb.mxu0 %v1600_v51 }
 0x272   : > { %v1466_v20 = vmul.f32 %v2315_v11, %v1465_v17  ;;  %2192 = vmatmul.msk.f32.vlgmr.msra.gmra.mxu0 %vm1307_vm2, %v1462_v18 }
 0x273   : > { %v1444_v22 = vpop.xlane.xlu2 %1443 }
 0x274   : > { %2316 = vrcp.f32 %v1444_v22  ;;  %v1467_v23 = vadd.f32 %v2315_v11, %v1466_v20  ;;  %v1489_v32 = vand.u32 2147483648, %v1444_v22  ;;  %v1487_v34 = vand.u32 2147483647, %v1444_v22 }
 0x275   : > { %vm1483_vm13 = vweird.f32 %v1444_v22 }
 0x276   : > { %v1471_v25 = vsel %vm1470_vm10, %v2315_v11, %v1467_v23  ;;  %v1490_v37 = vor.u32 1.1754944e-38, %v1489_v32  ;;  %vm1488_vm15 = vcmp.eq.f32.partialorder %v1487_v34, 8.507059e+37  ;;  %v1750_v23 = vld [vmem:[%s2673_s7 + $0x10] sm:$0xff] }
 0x277   : > { %v1476_v26 = vsel %vm1473_vm11, %v1475_v24, %v1471_v25  ;;  %v1749_v24 = vld [vmem:[%s2673_s7 + $0x8] sm:$0xff]  ;;  %v1748_v25 = vld [vmem:[%s2673_s7] sm:$0xff] }
 0x278   : > { %v1477_v27 = vmul.f32 %v2307_v54, %v1476_v26  ;;  %v1603_v54 = vld [vmem:[%s2656_s28 + $0x18] sm:$0xff] }
 0x279   : > { %1691 = vmatpush.msrb.mxu3 %v1603_v54  ;;  %v1787_v26 = vld [vmem:[%s2687_s11 + $0x38] sm:$0xff] }
 0x27a   : > { %v2317_v28 = vpop.eup %2316  ;;  %2193 = vmatmul.msk.f32.vlgmr.msrb.gmra.mxu1 %vm1307_vm2, %v1477_v27  ;;  %v1786_v27 = vld [vmem:[%s2687_s11 + $0x30] sm:$0xff] }
 0x27b   : > { %v1479_v29 = vmul.f32 %v2317_v28, %v1444_v22  ;;  %v1447_v30 = vpop.xlane.xlu2 %1446  ;;  %vm1484_vm12 = vweird.f32 %v2317_v28  ;;  %v1751_v22 = vld [vmem:[%s2673_s7 + $0x18] sm:$0xff]  ;;  %1804 = vmatpush.msrb.mxu1 %v1787_v26 }
 0x27c   : > { %2318 = vrcp.f32 %v1447_v30  ;;  %vm1485_vm14 = vmor %vm1483_vm13, %vm1484_vm12  ;;  %v1504_v43 = vand.u32 2147483648, %v1447_v30  ;;  %v1502_v45 = vand.u32 2147483647, %v1447_v30  ;;  %vm1498_vm3 = vweird.f32 %v1447_v30  ;;  %1771 = vmatpush.msra.mxu0 %v1751_v22 }
 0x27d   : > { %v1480_v31 = vsub.f32 1.0, %v1479_v29  ;;  %2320 = vrcp.f32 %v2423_v10  ;;  %1805 = vmatpush.msrb.mxu1 %v1786_v27  ;;  %v2303_v10 = vld [vmem:[%s945_s12] ss:$0 sm:$0xff] }
 0x27e   : > { %v1505_v47 = vor.u32 1.1754944e-38, %v1504_v43  ;;  %vm1503_vm5 = vcmp.eq.f32.partialorder %v1502_v45, 8.507059e+37  ;;  %1772 = vmatpush.msra.mxu0 %v1750_v23  ;;  %v2299_v43 = vld [vmem:[%s3062_s4] ss:$0 sm:$0xff] }
 0x27f   : > { %v1481_v33 = vmul.f32 %v2317_v28, %v1480_v31  ;;  %v1784_v31 = vld [vmem:[%s2687_s11 + $0x20] sm:$0xff] }
 0x280   : > { %1773 = vmatpush.msra.mxu0 %v1749_v24 }
 0x281   : > { %v1482_v35 = vadd.f32 %v2317_v28, %v1481_v33  ;;  %v1783_v33 = vld [vmem:[%s2687_s11 + $0x18] sm:$0xff] }
 0x282   : > { %v2319_v36 = vpop.eup %2318  ;;  %1774 = vmatpush.msra.mxu0 %v1748_v25 }
 0x283   : > { %v1486_v38 = vsel %vm1485_vm14, %v2317_v28, %v1482_v35  ;;  %v1494_v39 = vmul.f32 %v2319_v36, %v1447_v30  ;;  %vm1499_vm0 = vweird.f32 %v2319_v36  ;;  %v2321_v11 = vpop.eup %2320  ;;  %v1785_v28 = vld [vmem:[%s2687_s11 + $0x28] sm:$0xff] }
 0x284   : > { %v1491_v40 = vsel %vm1488_vm15, %v1490_v37, %v1486_v38  ;;  %vm1500_vm4 = vmor %vm1498_vm3, %vm1499_vm0  ;;  %v1713_v12 = vmul.f32 32.0, %v2321_v11  ;;  %1806 = vmatpush.msrb.mxu1 %v1785_v28 }
 0x285   : > { %v1495_v41 = vsub.f32 1.0, %v1494_v39  ;;  %v1492_v42 = vmul.f32 %v2810_v61, %v1491_v40  ;;  %v2298_v40 = vld [vmem:[%s3060_s20] ss:$0 sm:$0xff] }
 0x286   : > { %v1714_v13 = vsub.f32 1.0, %v1713_v12  ;;  %1807 = vmatpush.msrb.mxu1 %v1784_v31 }
 0x287   : > { %v1496_v44 = vmul.f32 %v2319_v36, %v1495_v41  ;;  %2194 = vmatmul.msk.f32.vlgmr.msrb.gmra.mxu2 %vm1307_vm2, %v1492_v42 }
 0x288   : > { %v1715_v14 = vmul.f32 %v2321_v11, %v1714_v13  ;;  %1808 = vmatpush.msrb.mxu1 %v1783_v33 }
 0x289   : > { %v1497_v46 = vadd.f32 %v2319_v36, %v1496_v44 }
 0x28a   : > { %v1716_v15 = vadd.f32 %v2321_v11, %v1715_v14 }
 0x28b   : > { %v1501_v48 = vsel %vm1500_vm4, %v2319_v36, %v1497_v46  ;;  %v1782_v46 = vld [vmem:[%s2687_s11 + $0x10] sm:$0xff] }
 0x28c   : > { %v1506_v49 = vsel %vm1503_vm5, %v1505_v47, %v1501_v48  ;;  %1809 = vmatpush.msrb.mxu1 %v1782_v46  ;;  %v1781_v47 = vld [vmem:[%s2687_s11 + $0x8] sm:$0xff]  ;;  %v1780_v48 = vld [vmem:[%s2687_s11] sm:$0xff] }
 0x28d   : > { %v1507_v50 = vmul.f32 %v2814_v0, %v1506_v49  ;;  %v2300_v49 = vld [vmem:[%s3063_s22] ss:$0 sm:$0xff] }
 0x28e   : > { %1810 = vmatpush.msrb.mxu1 %v1781_v47 }
 0x28f   : > { %2195 = vmatmul.msk.f32.vlgmr.msra.gmra.mxu3 %vm1307_vm2, %v1507_v50 }
 0x290   : > { %1811 = vmatpush.msrb.mxu1 %v1780_v48 }
 0x2ef   : > { %v1528_v55 = vpop.f32.mrf.mxu0 }
 0x2f0   : > { %2196 = vmatmul.msk.f32.vlgmr.msrb.gmra.mxu0 %vm1307_vm2, %v1528_v55 }
 0x2f7   : > { %v1551_v56 = vpop.f32.mrf.mxu1 }
 0x2f8   : > { %2197 = vmatmul.msk.f32.vlgmr.msra.gmra.mxu1 %vm1307_vm2, %v1551_v56 }
 0x30a   : > { %v1574_v57 = vpop.f32.mrf.mxu2 }
 0x30b   : > { %2198 = vmatmul.msk.f32.vlgmr.msra.gmra.mxu2 %vm1307_vm2, %v1574_v57 }
 0x312   : > { %v1597_v58 = vpop.f32.mrf.mxu3 }
 0x313   : > { %2199 = vmatmul.msk.f32.vlgmr.msrb.gmra.mxu3 %vm1307_vm2, %v1597_v58  ;;  %vm1717_vm2 = vweird.f32 %v2321_v11 }
 0x314   : > { %v2843_v17 = vsel %vm1717_vm2, %v2321_v11, %v1716_v15 }
 0x36d   : > { %v1624_v60 = vpop.f32.mrf.mxu0 }
 0x36e   : > { %v1696_v63 = vsel %vm992_vm1, %v1624_v60, 0.0 }
 0x375   : > { %v1647_v59 = vpop.f32.mrf.mxu1 }
 0x376   : > { %v1697_v62 = vsel %vm992_vm1, %v1647_v59, 0.0 }
 0x377   : > { %v1698_v1 = vadd.f32 %v1697_v62, %v1696_v63 }
 0x38e   : > { %v1670_v61 = vpop.f32.mrf.mxu2 }
 0x38f   : > { %v1699_v0 = vsel %vm992_vm1, %v1670_v61, 0.0 }
 0x390   : > { %v1700_v2 = vadd.f32 %v1699_v0, %v1698_v1 }
 0x396   : > { %v1693_v3 = vpop.f32.mrf.mxu3 }
 0x397   : > { %v1701_v5 = vsel %vm992_vm1, %v1693_v3, 0.0 }
 0x398   : > { %v1702_v6 = vadd.f32 %v1701_v5, %v1700_v2 }
 0x39a   : > { %v1707_v7 = vadd.f32 %v2297_v4, %v1702_v6 }
 0x39c   : > { %v1708_v8 = vadd.f32 %v1707_v7, %v2717_v16 }
 0x39e   : > { %v1709_v9 = vsel %vm992_vm1, %v1708_v8, 0.0 }
 0x39f   : > { %1710 = vadd.xlane.f32.xlu2 %v1709_v9 }
 0x412   : > { %v1711_v16 = vpop.xlane.xlu2 %1710 }
 0x413   : > { %v1719_v18 = vmul.f32 %v2843_v17, %v1711_v16 }
 0x415   : > { %v1720_v19 = vsub.f32 %v1708_v8, %v1719_v18  ;;  %v2302_v8 = vld [vmem:[%s942_s27] ss:$0 sm:$0xff] }
 0x417   : > { %v1721_v20 = vmul.f32 %v1720_v19, %v1720_v19 }
 0x419   : > { %v1722_v21 = vsel %vm992_vm1, %v1721_v20, 0.0 }
 0x41a   : > { %1723 = vadd.xlane.f32.xlu0 %v1722_v21 }
 0x48d   : > { %v1724_v29 = vpop.xlane.xlu0 %1723 }
 0x48e   : > { %v1725_v30 = vmul.f32 %v1724_v29, %v2843_v17 }
 0x490   : > { %v1726_v32 = vadd.f32 1e-05, %v1725_v30 }
 0x492   : > { %2322 = vrsqrt.f32 %v1726_v32  ;;  %vm1733_vm7 = vweird.f32 %v1726_v32 }
 0x498   : > { %v2323_v34 = vpop.eup %2322 }
 0x499   : > { %v1728_v35 = vmul.f32 %v2323_v34, %v1726_v32  ;;  %vm1734_vm6 = vweird.f32 %v2323_v34 }
 0x49a   : > { %vm1735_vm8 = vmor %vm1733_vm7, %vm1734_vm6 }
 0x49b   : > { %v1729_v36 = vmul.f32 %v2323_v34, %v1728_v35 }
 0x49d   : > { %v1730_v37 = vmul.f32 0.5, %v1729_v36 }
 0x49f   : > { %v1731_v38 = vsub.f32 1.5, %v1730_v37 }
 0x4a1   : > { %v1732_v39 = vmul.f32 %v2323_v34, %v1731_v38 }
 0x4a3   : > { %v1736_v41 = vsel %vm1735_vm8, %v2323_v34, %v1732_v39 }
 0x4a4   : > { %v1737_v42 = vmul.f32 %v1736_v41, %v1720_v19 }
 0x4a6   : > { %v1742_v44 = vmul.f32 %v2298_v40, %v1737_v42 }
 0x4a8   : > { %v1747_v45 = vadd.f32 %v2299_v43, %v1742_v44 }
 0x4aa   : > { %2200 = vmatmul.msk.f32.vlgmr.msra.gmra.mxu0 %vm992_vm1, %v1747_v45 }
 0x527   : > { %v1776_v50 = vpop.f32.mrf.mxu0 }
 0x528   : > { %v1777_v51 = vadd.f32 %v2300_v49, %v1776_v50 }
 0x52a   : > { %v1779_v52 = vmax.f32 %v1777_v51, 0.0 }
 0x52c   : > { %2201 = vmatmul.msk.f32.vlgmr.msrb.gmra.mxu1 %vm1792_vm9, %v1779_v52 }
 0x5a9   : > { %v1813_v54 = vpop.f32.mrf.mxu1 }
 0x5aa   : > { %v1814_v55 = vadd.f32 %v2301_v53, %v1813_v54 }
 0x5ac   : > { %v1816_v56 = vadd.f32 %v1814_v55, %v1747_v45 }
 0x5ae   : > { %v1817_v57 = vsel %vm992_vm1, %v1816_v56, 0.0 }
 0x5af   : > { %1818 = vadd.xlane.f32.xlu1 %v1817_v57 }
 0x622   : > { %v1819_v58 = vpop.xlane.xlu1 %1818 }
 0x623   : > { %v1820_v59 = vmul.f32 %v1819_v58, %v2843_v17 }
 0x625   : > { %v1821_v60 = vsub.f32 %v1816_v56, %v1820_v59 }
 0x627   : > { %v1822_v61 = vmul.f32 %v1821_v60, %v1821_v60 }
 0x629   : > { %v1823_v62 = vsel %vm992_vm1, %v1822_v61, 0.0 }
 0x62a   : > { %1824 = vadd.xlane.f32.xlu2 %v1823_v62 }
 0x69d   : > { %v1825_v63 = vpop.xlane.xlu2 %1824 }
 0x69e   : > { %v1826_v0 = vmul.f32 %v1825_v63, %v2843_v17 }
 0x6a0   : > { %v1827_v1 = vadd.f32 1e-05, %v1826_v0 }
 0x6a2   : > { %2324 = vrsqrt.f32 %v1827_v1  ;;  %vm1834_vm11 = vweird.f32 %v1827_v1 }
 0x6a8   : > { %v2325_v2 = vpop.eup %2324 }
 0x6a9   : > { %v1829_v3 = vmul.f32 %v2325_v2, %v1827_v1  ;;  %vm1835_vm10 = vweird.f32 %v2325_v2 }
 0x6aa   : > { %vm1836_vm12 = vmor %vm1834_vm11, %vm1835_vm10 }
 0x6ab   : > { %v1830_v4 = vmul.f32 %v2325_v2, %v1829_v3 }
 0x6ad   : > { %v1831_v5 = vmul.f32 0.5, %v1830_v4 }
 0x6af   : > { %v1832_v6 = vsub.f32 1.5, %v1831_v5 }
 0x6b1   : > { %v1833_v7 = vmul.f32 %v2325_v2, %v1832_v6 }
 0x6b3   : > { %v1837_v9 = vsel %vm1836_vm12, %v2325_v2, %v1833_v7 }
 0x6b4   : > { %v1838_v11 = vmul.f32 %v1837_v9, %v1821_v60 }
 0x6b6   : > { %v1843_v12 = vmul.f32 %v2302_v8, %v1838_v11  ;;  %1853 = sbr.rel (%p2202_p1) target bundleno = 1865 (0x749), region = 112 }
 0x6b8   : > { %v1848_v13 = vadd.f32 %v2303_v10, %v1843_v12 }
 0x6ba   : > { %1849 = vst.msk [vmem:[#allocation2] sm:$0xff] %vm992_vm1, %v1848_v13 }
 0x6bb   : > { %v1864_v14 = vld [vmem:[%s3067_s23 + $0x18] sm:$0xff]  ;;  %v1863_v15 = vld [vmem:[%s3067_s23 + $0x10] sm:$0xff]  ;;  %v1854_v17 = vsel %vm992_vm1, %v1848_v13, -inf  ;;  %v1862_v18 = vld [vmem:[%s3067_s23 + $0x8] sm:$0xff]  ;;  %vm1889_vm13 = vcmask 8192  }
 0x6bc   : > { %1881 = vmatpush.msra.mxu0 %v1864_v14  ;;  %v1855_v16 = vrot.slane %v1854_v17, 4  ;;  %v1861_v20 = vld [vmem:[%s3067_s23] sm:$0xff] }
 0x6bd   : > { %v1865_v25 = vld [vmem:[%s3068_s29] sm:$0x1] }
 0x6be   : > { %1882 = vmatpush.msra.mxu0 %v1863_v15  ;;  %v1856_v19 = vmax.f32 %v1854_v17, %v1855_v16 }
 0x6c0   : > { %1883 = vmatpush.msra.mxu0 %v1862_v18  ;;  %v1857_v21 = vrot.slane %v1856_v19, 2 }
 0x6c2   : > { %1884 = vmatpush.msra.mxu0 %v1861_v20  ;;  %v1858_v22 = vmax.f32 %v1856_v19, %v1857_v21 }
 0x6c4   : > { %v1859_v23 = vrot.slane %v1858_v22, 1 }
 0x6c6   : > { %v1860_v24 = vmax.f32 %v1858_v22, %v1859_v23 }
 0x6c8   : > { %2203 = vmatmul.msk.f32.vlgmr.msra.gmra.mxu0 %vm992_vm1, %v1860_v24 }
 0x745   : > { %v1886_v26 = vpop.f32.mrf.mxu0 }
 0x746   : > { %v1887_v27 = vadd.f32 %v1886_v26, %v1865_v25 }
 0x748   : > { %1890 = vst.msk [vmem:[%s2699_s26] sm:$0x1] %vm1889_vm13, %v1887_v27 }
 0x749 PF: > { %s3069_s15 = sld [smem:[#allocation9_spill]]  ;;  %s1902_s9 = sshll.u32 %s2699_s26, 4  ;;  %s1903_s9 = int_to_ptr.vmem [resolvable:$true] %s1902_s9 }
 0x74a   : > { %s3070_s24 = sld [smem:[#allocation39_spill]]  ;;  %s3072_s11 = sand.u32 1, %s2396_s25  }
 0x74b   : > { %s1892_s13 = scalar_lea.sflag [#allocation4], %s3072_s11 }
 0x750   : > { %s1900_s8 = scalar_lea.hbm %s3070_s24, %s3069_s15  ;;  %s2346_s28 = scalar_lea.hbm %s3070_s24, 2 }
 0x751   : > { %s1904_s6 = sshll.u32 %s1900_s8, 4  ;;  %s1905_s6 = int_to_ptr.hbm [resolvable:$true] %s1904_s6 }
 0x752   : > { %s2340_s19 = sshra.s32 %s1905_s6, 4  ;;  %s2341_s19 = int_to_ptr.hbm [resolvable:$true] %s2340_s19 }
 0x753   : > { %s2342_s0 = scalar_lea.hbm %s2341_s19, 1  ;;  %p2347_p6 = scmp.lt.s32.totalorder %s2341_s19, %s3070_s24 }
 0x754   : > { %p2343_p2 = scmp.ne.s32.totalorder %s2341_s19, %s2342_s0  ;;  %p2348_p7 = scmp.lt.s32.totalorder %s2346_s28, %s2342_s0 }
 0x756   : > { %p2344_p4 = pnand %p2343_p2, %p2583_p3  ;;  %p2349_p8 = por %p2348_p7, %p2347_p6 }
 0x758   : > { %p2345_p5 = pneg %p2344_p4 }
 0x75a   : > { %p2350_p10 = pnand %p2349_p8, %p2345_p5 }
 0x75c   : > { %2353 = shalt.err (!%p2350_p10)
}
 0x75d   : > { %2212 = dma.vmem_to_hbm [thread:$0]  (%p2583_p3), %s1903_s9, 16, %s1905_s6, %s1892_s13  }
 0x75e PF: > { %s3073_s26 = sld [smem:[#allocation12_spill]] }
 0x75f   : > { %s3074_s7 = sld [smem:[#allocation6_spill]] }
 0x764   : > { %p2218_p11 = scmp.ge.s32.totalorder %s3073_s26, 2 }
 0x765   : > { %s1916_s1 = sand.u32 1, %s3074_s7  }
 0x766   : > { %p2215_p12 = pnand %p2218_p11, %p2593_p9  ;;  %s1917_s17 = scalar_lea.sflag [#allocation4], %s1916_s1 }
 0x768   : > { %p2216_p13 = pneg %p2215_p12 }
 0x76a   : > { %2387 = dma.done.wait (%p2216_p13), %s1917_s17, 16  }
 0x76b   : > { %2389 = vsyncadd (%p2216_p13), %s1917_s17, 4294967280  ;;  %s34_s0 = sadd.s32 1, %s3073_s26   ;;  %s3076_s21 = sld [smem:[#allocation7_spill]] }
 0x76c   : > { %p31_p0 = scmp.ge.s32.totalorder %s34_s0, 6   ;;  %s3077_s26 = sld [smem:[#allocation17_spill]] }
 0x76d   : > { %s3078_s27 = sld [smem:[#allocation10_spill]]  ;;  %s3082_s2 = smov %s2396_s25 }
 0x76e   : > { %s3079_s3 = sld [smem:[#allocation11_spill]]  ;;  %33 = sbr.rel (!%p31_p0) target bundleno = 25 (0x19), region = 198 }
 0x76f   : > { %s3080_s28 = sld [smem:[#allocation13_spill]] }
 0x770   : > { %s3081_s29 = sld [smem:[#allocation15_spill]] }
 0x771   : > { %s3083_s25 = smov %s3076_s21 }
 0x773   :  { %1922 = vsyncpa [#allocation4], 1 }
 0x774   :  { %1924 = vsyncpa [#allocation4 + $0x1], 1 }

</bundles_post_ra>
